<compile_context>
chip_gen: v5e
topology: v5e:2x2
jax: 0.10.0
libtpu: 0.0.40
codegen_flags: <defaults>
</compile_context>

<pallas_src>
import jax
import jax.numpy as jnp
from jax.experimental import pallas as pl
from jax.experimental.pallas import tpu as pltpu

FEAT = 784          # feature width assumed by Linear(784, 128); SDPA scale uses q.size(-1) = 784
LANE = 128


def _round_up(x, m):
    return (x + m - 1) // m * m


# ----------------------------------------------------------------------------- fused kernel
def siamese_kernel(patches_ref,            # (2B*P, Kp)  bf16  stacked im2col, both images
                   wconv_ref,              # (Kp, Fp)    bf16  stem conv weight (zero-padded)
                   w1_ref, b1_ref,         # (Fp, 128)  bf16 / (1, 128) f32
                   w2_ref, b2_ref,         # (128, 128) bf16 / (1, 128) f32  (zero-padded 64->128)
                   w3_ref, b3_ref,         # (128, 128) bf16 / (1, 128) f32  (zero-padded 1->128)
                   out_ref):               # (B, 128)    f32   result in lane 0, rest zero
    B = out_ref.shape[0]
    rows = patches_ref.shape[0]            # 2B*P
    P = rows // (2 * B)

    # ---- backbone stand-in: conv-as-matmul (bf16 MXU, f32 accumulate) + ReLU
    y = jnp.dot(patches_ref[...], wconv_ref[...],
                preferred_element_type=jnp.float32)                       # (2B*P, Fp)
    y = jnp.maximum(y, 0.0)

    # ---- global average pool: free reshape + sublane mean (XLU), no pooling matrix / extra DMA
    Fp = y.shape[1]
    feat = jnp.mean(y.reshape(2 * B, P, Fp), axis=1)                      # (2B, Fp)
    f1 = feat[:B, :]
    f2 = feat[B:, :]

    # ---- forward_once: F.normalize(dim=1), eps = 1e-12  (rsqrt -> EUP slot)
    def l2norm(x):
        ss = jnp.sum(x * x, axis=1, keepdims=True)
        return x * jax.lax.rsqrt(jnp.maximum(ss, 1e-24))

    o1 = l2norm(f1)
    o2 = l2norm(f2)

    # ---- (1 - cosine_similarity(o1, o2, dim=1))^2 ; o1/o2 are unit-norm so cos = <o1, o2>
    cos = jnp.sum(o1 * o2, axis=1, keepdims=True)                         # (B, 1)
    sq = (1.0 - cos) ** 2

    # ---- scaled_dot_product_attention(q=o1, k=o2, v=o1): 2-D tensors attend over the batch.
    # scale uses the true (un-padded) embedding dim 784, matching torch's q.size(-1).
    # MXU operands cast to bf16 explicitly (f32 accumulation).
    o1_b = o1.astype(jnp.bfloat16)
    o2_b = o2.astype(jnp.bfloat16)
    scale = 1.0 / jnp.sqrt(jnp.float32(FEAT))
    scores = jax.lax.dot_general(o1_b, o2_b, (((1,), (1,)), ((), ())),
                                 preferred_element_type=jnp.float32) * scale   # (B, B)
    m = jnp.max(scores, axis=-1, keepdims=True)
    e = jnp.exp(scores - m)
    probs = e * pl.reciprocal(jnp.sum(e, axis=-1, keepdims=True), approx=True)
    attn = jnp.dot(probs.astype(jnp.bfloat16), o1_b,
                   preferred_element_type=jnp.float32)                    # (B, Fp)

    # ---- F.normalize(attn, dim=1)
    attn_n = l2norm(attn)

    # ---- fc: Linear(784,128) ReLU Dropout Linear(128,64) ReLU Dropout Linear(64,1)
    # TODO(synk): Dropout(0.3) is evaluated in eval mode (identity).
    h1 = jnp.maximum(jnp.dot(attn_n.astype(jnp.bfloat16), w1_ref[...],
                             preferred_element_type=jnp.float32) + b1_ref[...], 0.0)
    h2 = jnp.maximum(jnp.dot(h1.astype(jnp.bfloat16), w2_ref[...],
                             preferred_element_type=jnp.float32) + b2_ref[...], 0.0)
    fc = jnp.dot(h2.astype(jnp.bfloat16), w3_ref[...],
                 preferred_element_type=jnp.float32) + b3_ref[...]        # (B, 128)

    # ---- attention_output + (1 - cos)^2: both are (B,1) in torch, so a per-row scalar add.
    # Keep only lane 0; zero the padding lanes so the output slab carries no garbage.
    lane = jax.lax.broadcasted_iota(jnp.int32, fc.shape, 1)
    out_ref[...] = jnp.where(lane == 0, fc + sq, 0.0).astype(out_ref.dtype)


# ----------------------------------------------------------------------------- wrapper
def siamese_pallas(patches_all, wconv_p, w1p, b1p, w2p, b2p, w3p, b3p, *, batch):
    # Whole-array, unblocked VMEM residents: no grid, no pipeline double-buffering.
    vmem = pl.BlockSpec(memory_space=pltpu.MemorySpace.VMEM)
    # TODO(synk): on v7x (2 TCs/chip) the conv rows could be split across cores with a
    #             grid=(2,) 'parallel' axis + cross-core head; single-core here since the
    #             B=2 workload is tiny and v5e/v6e have one TensorCore.
    return pl.pallas_call(
        siamese_kernel,
        out_shape=jax.ShapeDtypeStruct((batch, LANE), jnp.float32),
        in_specs=[vmem] * 8,
        out_specs=vmem,
    )(patches_all, wconv_p, w1p, b1p, w2p, b2p, w3p, b3p)


# ----------------------------------------------------------------------------- glue
def extract_patches_nchw(x, kh=3, kw=3, stride=2, pad=1):
    """(N, C, H, W) -> (N, OH*OW, C*kh*kw) im2col patches."""
    N, C, H, W = x.shape
    xp = jnp.pad(x, ((0, 0), (0, 0), (pad, pad), (pad, pad)))
    OH = (H + 2 * pad - kh) // stride + 1
    OW = (W + 2 * pad - kw) // stride + 1
    taps = []
    for i in range(kh):
        for j in range(kw):
            taps.append(xp[:, :, i:i + stride * OH:stride, j:j + stride * OW:stride])
    p = jnp.stack(taps, axis=1)                      # (N, kh*kw, C, OH, OW)
    p = jnp.transpose(p, (0, 3, 4, 2, 1))            # (N, OH, OW, C, kh*kw)
    return p.reshape(N, OH * OW, C * kh * kw)


def xavier_uniform(key, fan_in, fan_out):
    bound = jnp.sqrt(6.0 / (fan_in + fan_out))
    return jax.random.uniform(key, (fan_in, fan_out), jnp.float32, -bound, bound)


def init_params(key, in_ch=3, kh=3, kw=3):
    ks = jax.random.split(key, 5)
    # backbone stand-in conv weight (convs are not nn.Linear, so init_weights wouldn't touch them)
    k_fan = in_ch * kh * kw
    w_conv = jax.random.normal(ks[0], (k_fan, FEAT), jnp.float32) * jnp.sqrt(2.0 / k_fan)
    # fc: xavier_uniform weights, bias = 0.01 (matches SiameseNN.init_weights)
    w1 = xavier_uniform(ks[1], FEAT, 128); b1 = jnp.full((1, 128), 0.01, jnp.float32)
    w2 = xavier_uniform(ks[2], 128, 64);   b2 = jnp.full((1, 64), 0.01, jnp.float32)
    w3 = xavier_uniform(ks[3], 64, 1);     b3 = jnp.full((1, 1), 0.01, jnp.float32)
    return w_conv, (w1, b1, w2, b2, w3, b3)


def pad_params(w_conv, fc_params):
    """Zero-pad parameters to lane-dense (multiple-of-128) shapes; cast MXU weights to bf16.

    Padding is with zeros everywhere, so the padded feature/hidden lanes stay exactly zero and
    the math in lane 0 is identical to the un-padded computation.
    """
    w1, b1, w2, b2, w3, b3 = fc_params
    K, F = w_conv.shape
    Kp, Fp = _round_up(K, LANE), _round_up(F, LANE)          # 128, 896

    wconv_p = jnp.zeros((Kp, Fp), jnp.float32).at[:K, :F].set(w_conv).astype(jnp.bfloat16)
    w1p = jnp.zeros((Fp, 128), jnp.float32).at[:F, :].set(w1).astype(jnp.bfloat16)
    b1p = b1                                                                  # (1, 128) f32
    w2p = jnp.zeros((128, 128), jnp.float32).at[:, :64].set(w2).astype(jnp.bfloat16)
    b2p = jnp.zeros((1, 128), jnp.float32).at[:, :64].set(b2)
    w3p = jnp.zeros((128, 128), jnp.float32).at[:64, :1].set(w3).astype(jnp.bfloat16)
    b3p = jnp.zeros((1, 128), jnp.float32).at[:, :1].set(b3)
    return wconv_p, w1p, b1p, w2p, b2p, w3p, b3p


@jax.jit
def siamese_forward(input1, input2, wconv_p, w1p, b1p, w2p, b2p, w3p, b3p):
    B = input1.shape[0]
    # one im2col over both images (stacked) -> single slice/stack/transpose chain, fuses with pad+cast
    x = jnp.concatenate([input1, input2], axis=0)            # (2B, C, H, W)
    p = extract_patches_nchw(x)                              # (2B, P, K)
    _, P, K = p.shape
    Kp = wconv_p.shape[0]
    p_flat = jnp.pad(p.reshape(2 * B * P, K),
                     ((0, 0), (0, Kp - K))).astype(jnp.bfloat16)          # (2B*P, Kp)

    out = siamese_pallas(p_flat, wconv_p, w1p, b1p, w2p, b2p, w3p, b3p, batch=B)
    return out[:, :1]                                        # (B, 1)


# ----------------------------------------------------------------------------- main
if __name__ == "__main__":
    key = jax.random.PRNGKey(0)
    k_in1, k_in2, k_par = jax.random.split(key, 3)

    B, C, H, W = 2, 3, 16, 16  # small NCHW images, 3 channels as the RegNet stem expects
    input1 = jax.random.normal(k_in1, (B, C, H, W), jnp.float32)
    input2 = jax.random.normal(k_in2, (B, C, H, W), jnp.float32)

    w_conv, fc_params = init_params(k_par)
    padded = pad_params(w_conv, fc_params)

    out = siamese_forward(input1, input2, *padded)
    out = jax.block_until_ready(out)
    assert out.shape == (B, 1), out.shape
    print("KERNEL_OK")
</pallas_src>

<mosaic_0001>
module attributes {stable_mosaic.version = 11 : i64} {
  func.func @siamese_kernel(%arg0: memref<256x128xbf16, #tpu.memory_space<vmem>>, %arg1: memref<128x896xbf16, #tpu.memory_space<vmem>>, %arg2: memref<896x128xbf16, #tpu.memory_space<vmem>>, %arg3: memref<1x128xf32, #tpu.memory_space<vmem>>, %arg4: memref<128x128xbf16, #tpu.memory_space<vmem>>, %arg5: memref<1x128xf32, #tpu.memory_space<vmem>>, %arg6: memref<128x128xbf16, #tpu.memory_space<vmem>>, %arg7: memref<1x128xf32, #tpu.memory_space<vmem>>, %arg8: memref<2x128xf32, #tpu.memory_space<vmem>>) attributes {dimension_semantics = [], scalar_prefetch = 0 : i64, scratch_operands = 0 : i64, tpu.core_type = #tpu.core_type<tc>} {
    %c0 = arith.constant 0 : index
    %c0_0 = arith.constant 0 : index
    %0 = vector.load %arg0[%c0, %c0_0] : memref<256x128xbf16, #tpu.memory_space<vmem>>, vector<256x128xbf16>
    %c0_1 = arith.constant 0 : index
    %c0_2 = arith.constant 0 : index
    %1 = vector.load %arg1[%c0_1, %c0_2] : memref<128x896xbf16, #tpu.memory_space<vmem>>, vector<128x896xbf16>
    %cst = arith.constant dense<0.000000e+00> : vector<256x896xf32>
    %2 = tpu.matmul %0, %1, %cst {dimension_numbers = #tpu.dot_dimension_numbers<[1], [0], [0], [1], [0, 0, 1, 1], [], []>} : vector<256x128xbf16>, vector<128x896xbf16>, vector<256x896xf32> -> vector<256x896xf32>
    %cst_3 = arith.constant 0.000000e+00 : f32
    %3 = vector.broadcast %cst_3 : f32 to vector<256x896xf32>
    %4 = arith.maximumf %2, %3 : vector<256x896xf32>
    %5 = vector.shape_cast %4 : vector<256x896xf32> to vector<4x64x896xf32>
    %cst_4 = arith.constant dense<0.000000e+00> : vector<4x896xf32>
    %6 = vector.multi_reduction <add>, %5, %cst_4 [1] : vector<4x64x896xf32> to vector<4x896xf32>
    %cst_5 = arith.constant 6.400000e+01 : f32
    %7 = vector.broadcast %cst_5 : f32 to vector<4x896xf32>
    %8 = arith.divf %6, %7 : vector<4x896xf32>
    %9 = vector.extract_strided_slice %8 {offsets = [0, 0], sizes = [2, 896], strides = [1, 1]} : vector<4x896xf32> to vector<2x896xf32>
    %10 = vector.extract_strided_slice %8 {offsets = [2, 0], sizes = [2, 896], strides = [1, 1]} : vector<4x896xf32> to vector<2x896xf32>
    %11 = arith.mulf %9, %9 : vector<2x896xf32>
    %cst_6 = arith.constant dense<0.000000e+00> : vector<2xf32>
    %12 = vector.multi_reduction <add>, %11, %cst_6 [1] : vector<2x896xf32> to vector<2xf32>
    %13 = vector.shape_cast %12 : vector<2xf32> to vector<2x1xf32>
    %cst_7 = arith.constant 1.000000e-24 : f32
    %14 = vector.broadcast %cst_7 : f32 to vector<2x1xf32>
    %15 = arith.maximumf %13, %14 : vector<2x1xf32>
    %16 = math.rsqrt %15 : vector<2x1xf32>
    %17 = vector.broadcast %16 : vector<2x1xf32> to vector<2x896xf32>
    %18 = arith.mulf %9, %17 : vector<2x896xf32>
    %19 = arith.mulf %10, %10 : vector<2x896xf32>
    %cst_8 = arith.constant dense<0.000000e+00> : vector<2xf32>
    %20 = vector.multi_reduction <add>, %19, %cst_8 [1] : vector<2x896xf32> to vector<2xf32>
    %21 = vector.shape_cast %20 : vector<2xf32> to vector<2x1xf32>
    %cst_9 = arith.constant 1.000000e-24 : f32
    %22 = vector.broadcast %cst_9 : f32 to vector<2x1xf32>
    %23 = arith.maximumf %21, %22 : vector<2x1xf32>
    %24 = math.rsqrt %23 : vector<2x1xf32>
    %25 = vector.broadcast %24 : vector<2x1xf32> to vector<2x896xf32>
    %26 = arith.mulf %10, %25 : vector<2x896xf32>
    %27 = arith.mulf %18, %26 : vector<2x896xf32>
    %cst_10 = arith.constant dense<0.000000e+00> : vector<2xf32>
    %28 = vector.multi_reduction <add>, %27, %cst_10 [1] : vector<2x896xf32> to vector<2xf32>
    %29 = vector.shape_cast %28 : vector<2xf32> to vector<2x1xf32>
    %cst_11 = arith.constant 1.000000e+00 : f32
    %30 = vector.broadcast %cst_11 : f32 to vector<2x1xf32>
    %31 = arith.subf %30, %29 : vector<2x1xf32>
    %32 = arith.mulf %31, %31 : vector<2x1xf32>
    %33 = arith.truncf %18 : vector<2x896xf32> to vector<2x896xbf16>
    %34 = arith.truncf %26 : vector<2x896xf32> to vector<2x896xbf16>
    %cst_12 = arith.constant 7.840000e+02 : f32
    %35 = math.sqrt %cst_12 : f32
    %cst_13 = arith.constant 1.000000e+00 : f32
    %36 = arith.divf %cst_13, %35 : f32
    %cst_14 = arith.constant dense<0.000000e+00> : vector<2x2xf32>
    %37 = tpu.matmul %33, %34, %cst_14 {dimension_numbers = #tpu.dot_dimension_numbers<[1], [1], [0], [0], [0, 0, 1, 0], [], []>} : vector<2x896xbf16>, vector<2x896xbf16>, vector<2x2xf32> -> vector<2x2xf32>
    %38 = vector.broadcast %36 : f32 to vector<2x2xf32>
    %39 = arith.mulf %37, %38 : vector<2x2xf32>
    %cst_15 = arith.constant dense<0xFF800000> : vector<2xf32>
    %40 = vector.multi_reduction <maximumf>, %39, %cst_15 [1] : vector<2x2xf32> to vector<2xf32>
    %41 = vector.shape_cast %40 : vector<2xf32> to vector<2x1xf32>
    %42 = vector.broadcast %41 : vector<2x1xf32> to vector<2x2xf32>
    %43 = arith.subf %39, %42 : vector<2x2xf32>
    %44 = math.exp %43 : vector<2x2xf32>
    %cst_16 = arith.constant dense<0.000000e+00> : vector<2xf32>
    %45 = vector.multi_reduction <add>, %44, %cst_16 [1] : vector<2x2xf32> to vector<2xf32>
    %46 = vector.shape_cast %45 : vector<2xf32> to vector<2x1xf32>
    %47 = tpu.reciprocal %46 {approx = true} : vector<2x1xf32> -> vector<2x1xf32>
    %48 = vector.broadcast %47 : vector<2x1xf32> to vector<2x2xf32>
    %49 = arith.mulf %44, %48 : vector<2x2xf32>
    %50 = arith.truncf %49 : vector<2x2xf32> to vector<2x2xbf16>
    %cst_17 = arith.constant dense<0.000000e+00> : vector<2x896xf32>
    %51 = tpu.matmul %50, %33, %cst_17 {dimension_numbers = #tpu.dot_dimension_numbers<[1], [0], [0], [1], [0, 0, 1, 1], [], []>} : vector<2x2xbf16>, vector<2x896xbf16>, vector<2x896xf32> -> vector<2x896xf32>
    %52 = arith.mulf %51, %51 : vector<2x896xf32>
    %cst_18 = arith.constant dense<0.000000e+00> : vector<2xf32>
    %53 = vector.multi_reduction <add>, %52, %cst_18 [1] : vector<2x896xf32> to vector<2xf32>
    %54 = vector.shape_cast %53 : vector<2xf32> to vector<2x1xf32>
    %cst_19 = arith.constant 1.000000e-24 : f32
    %55 = vector.broadcast %cst_19 : f32 to vector<2x1xf32>
    %56 = arith.maximumf %54, %55 : vector<2x1xf32>
    %57 = math.rsqrt %56 : vector<2x1xf32>
    %58 = vector.broadcast %57 : vector<2x1xf32> to vector<2x896xf32>
    %59 = arith.mulf %51, %58 : vector<2x896xf32>
    %60 = arith.truncf %59 : vector<2x896xf32> to vector<2x896xbf16>
    %c0_20 = arith.constant 0 : index
    %c0_21 = arith.constant 0 : index
    %61 = vector.load %arg2[%c0_20, %c0_21] : memref<896x128xbf16, #tpu.memory_space<vmem>>, vector<896x128xbf16>
    %cst_22 = arith.constant dense<0.000000e+00> : vector<2x128xf32>
    %62 = tpu.matmul %60, %61, %cst_22 {dimension_numbers = #tpu.dot_dimension_numbers<[1], [0], [0], [1], [0, 0, 1, 1], [], []>} : vector<2x896xbf16>, vector<896x128xbf16>, vector<2x128xf32> -> vector<2x128xf32>
    %c0_23 = arith.constant 0 : index
    %c0_24 = arith.constant 0 : index
    %63 = vector.load %arg3[%c0_23, %c0_24] : memref<1x128xf32, #tpu.memory_space<vmem>>, vector<1x128xf32>
    %64 = vector.broadcast %63 : vector<1x128xf32> to vector<2x128xf32>
    %65 = arith.addf %62, %64 : vector<2x128xf32>
    %cst_25 = arith.constant 0.000000e+00 : f32
    %66 = vector.broadcast %cst_25 : f32 to vector<2x128xf32>
    %67 = arith.maximumf %65, %66 : vector<2x128xf32>
    %68 = arith.truncf %67 : vector<2x128xf32> to vector<2x128xbf16>
    %c0_26 = arith.constant 0 : index
    %c0_27 = arith.constant 0 : index
    %69 = vector.load %arg4[%c0_26, %c0_27] : memref<128x128xbf16, #tpu.memory_space<vmem>>, vector<128x128xbf16>
    %cst_28 = arith.constant dense<0.000000e+00> : vector<2x128xf32>
    %70 = tpu.matmul %68, %69, %cst_28 {dimension_numbers = #tpu.dot_dimension_numbers<[1], [0], [0], [1], [0, 0, 1, 1], [], []>} : vector<2x128xbf16>, vector<128x128xbf16>, vector<2x128xf32> -> vector<2x128xf32>
    %c0_29 = arith.constant 0 : index
    %c0_30 = arith.constant 0 : index
    %71 = vector.load %arg5[%c0_29, %c0_30] : memref<1x128xf32, #tpu.memory_space<vmem>>, vector<1x128xf32>
    %72 = vector.broadcast %71 : vector<1x128xf32> to vector<2x128xf32>
    %73 = arith.addf %70, %72 : vector<2x128xf32>
    %cst_31 = arith.constant 0.000000e+00 : f32
    %74 = vector.broadcast %cst_31 : f32 to vector<2x128xf32>
    %75 = arith.maximumf %73, %74 : vector<2x128xf32>
    %76 = arith.truncf %75 : vector<2x128xf32> to vector<2x128xbf16>
    %c0_32 = arith.constant 0 : index
    %c0_33 = arith.constant 0 : index
    %77 = vector.load %arg6[%c0_32, %c0_33] : memref<128x128xbf16, #tpu.memory_space<vmem>>, vector<128x128xbf16>
    %cst_34 = arith.constant dense<0.000000e+00> : vector<2x128xf32>
    %78 = tpu.matmul %76, %77, %cst_34 {dimension_numbers = #tpu.dot_dimension_numbers<[1], [0], [0], [1], [0, 0, 1, 1], [], []>} : vector<2x128xbf16>, vector<128x128xbf16>, vector<2x128xf32> -> vector<2x128xf32>
    %c0_35 = arith.constant 0 : index
    %c0_36 = arith.constant 0 : index
    %79 = vector.load %arg7[%c0_35, %c0_36] : memref<1x128xf32, #tpu.memory_space<vmem>>, vector<1x128xf32>
    %80 = vector.broadcast %79 : vector<1x128xf32> to vector<2x128xf32>
    %81 = arith.addf %78, %80 : vector<2x128xf32>
    %82 = tpu.iota {dimensions = array<i32: 1>} : vector<2x128xi32>
    %c0_i32 = arith.constant 0 : i32
    %83 = vector.broadcast %c0_i32 : i32 to vector<2x128xi32>
    %84 = arith.cmpi eq, %82, %83 : vector<2x128xi32>
    %85 = vector.broadcast %32 : vector<2x1xf32> to vector<2x128xf32>
    %86 = arith.addf %81, %85 : vector<2x128xf32>
    %cst_37 = arith.constant 0.000000e+00 : f32
    %87 = vector.broadcast %cst_37 : f32 to vector<2x128xf32>
    %88 = arith.select %84, %86, %87 : vector<2x128xi1>, vector<2x128xf32>
    %c0_38 = arith.constant 0 : index
    %c0_39 = arith.constant 0 : index
    %89 = vector.load %arg8[%c0_38, %c0_39] : memref<2x128xf32, #tpu.memory_space<vmem>>, vector<2x128xf32>
    tpu.vector_store %arg8[%c0_38, %c0_39], %88 {strides = array<i32>} : memref<2x128xf32, #tpu.memory_space<vmem>>, vector<2x128xf32>,
    return
  }
}

</mosaic_0001>

<bundles_post_ra>
// kernel: siamese_forward.1
= control target key start
LH: loop header
LB: loop body
LE: loop exit
PB: predicated region body
PF: predicated region fallthrough
CT: control target
= control target key end

     0   :  { %vm1784_vm1 = vcmask 1041409   ;;  %vm1799_vm2 = vcmask 1041408   ;;  %vm2245_vm9 = vcmask 1040384   ;;  %vm2228_vm10 = vcmask 9216   ;;  %s5280_s1 = inlined_call_operand.vmem [shape: bf16[128,896], index: 1, kind: input, shape index: {}]   ;;  %s5281_s0 = inlined_call_operand.vmem [shape: bf16[256,128], index: 0, kind: input, shape index: {}]   ;;  %s5282_s2 = inlined_call_operand.vmem [shape: bf16[896,128], index: 2, kind: input, shape index: {}]   ;;  %s5283_s3 = inlined_call_operand.vmem [shape: f32[1,128], index: 3, kind: input, shape index: {}]   ;;  %s5284_s5 = inlined_call_operand.vmem [shape: f32[1,128], index: 5, kind: input, shape index: {}]   ;;  %s5285_s4 = inlined_call_operand.vmem [shape: bf16[128,128], index: 4, kind: input, shape index: {}]   ;;  %s5286_s6 = inlined_call_operand.vmem [shape: bf16[128,128], index: 6, kind: input, shape index: {}]   ;;  %s5287_s7 = inlined_call_operand.vmem [shape: f32[1,128], index: 7, kind: input, shape index: {}]   ;;  %s5288_s8 = inlined_call_operand.vmem [shape: f32[2,128], index: 8, kind: output, shape index: {}]  }
   0x1   :  { %v3386_v0 = vld [vmem:[%s5280_s1 + $0x188] sm:$0xf]  ;;  %v3775_v1 = vld [vmem:[%s5280_s1 + $0x1a0] sm:$0xf0]  ;;  %v3772_v2 = vld [vmem:[%s5280_s1 + $0x18c] sm:$0xf] }
   0x2   :  { %v3387_v3 = vor.u32 %v3775_v1, %v3386_v0  ;;  %v3388_v4 = vld [vmem:[%s5280_s1 + $0x1a4] sm:$0xf0]  ;;  %v3394_v5 = vld [vmem:[%s5280_s1 + $0x190] sm:$0xf]  ;;  %v3776_v6 = vld [vmem:[%s5280_s1 + $0x1a8] sm:$0xf0] }
   0x3   :  { %v3391_v7 = vor.u32 %v3772_v2, %v3388_v4  ;;  %v3395_v8 = vor.u32 %v3776_v6, %v3394_v5  ;;  %v3773_v9 = vld [vmem:[%s5280_s1 + $0x194] sm:$0xf]  ;;  %v3396_v10 = vld [vmem:[%s5280_s1 + $0x1ac] sm:$0xf0]  ;;  %v3768_v13 = vld [vmem:[%s5280_s1 + $0x168] sm:$0xf0] }
   0x4   :  { %v3358_v11 = vld [vmem:[%s5280_s1 + $0x150] sm:$0xf]  ;;  %510 = vmatpush.bf16.msra.mxu0 %v3387_v3  ;;  %v3399_v12 = vor.u32 %v3773_v9, %v3396_v10  ;;  %v3765_v14 = vld [vmem:[%s5280_s1 + $0x154] sm:$0xf]  ;;  %v3366_v18 = vld [vmem:[%s5280_s1 + $0x158] sm:$0xf] }
   0x5   :  { %v3360_v15 = vld [vmem:[%s5280_s1 + $0x16c] sm:$0xf0]  ;;  %599 = vmatpush.bf16.msra.mxu1 %v3391_v7  ;;  %688 = vmatpush.bf16.msra.mxu2 %v3395_v8  ;;  %v3359_v16 = vor.u32 %v3768_v13, %v3358_v11  ;;  %v3769_v19 = vld [vmem:[%s5280_s1 + $0x170] sm:$0xf0]  ;;  %v3766_v20 = vld [vmem:[%s5280_s1 + $0x15c] sm:$0xf] }
   0x6   :  { %v3363_v17 = vor.u32 %v3765_v14, %v3360_v15  ;;  %777 = vmatpush.bf16.msra.mxu3 %v3399_v12  ;;  %v3367_v21 = vor.u32 %v3769_v19, %v3366_v18  ;;  %v3368_v22 = vld [vmem:[%s5280_s1 + $0x174] sm:$0xf0]  ;;  %v3761_v24 = vld [vmem:[%s5280_s1 + $0x130] sm:$0xf0]  ;;  %v3758_v26 = vld [vmem:[%s5280_s1 + $0x11c] sm:$0xf] }
   0x7   :  { %v3330_v23 = vld [vmem:[%s5280_s1 + $0x118] sm:$0xf]  ;;  %v3371_v25 = vor.u32 %v3766_v20, %v3368_v22  ;;  %v3338_v28 = vld [vmem:[%s5280_s1 + $0x120] sm:$0xf]  ;;  %v3762_v30 = vld [vmem:[%s5280_s1 + $0x138] sm:$0xf0] }
   0x8   :  { %v3332_v27 = vld [vmem:[%s5280_s1 + $0x134] sm:$0xf0]  ;;  %511 = vmatpush.bf16.msra.mxu0 %v3359_v16  ;;  %v3331_v29 = vor.u32 %v3761_v24, %v3330_v23  ;;  %v3759_v31 = vld [vmem:[%s5280_s1 + $0x124] sm:$0xf]  ;;  %v3340_v32 = vld [vmem:[%s5280_s1 + $0x13c] sm:$0xf0]  ;;  %v3339_v34 = vor.u32 %v3762_v30, %v3338_v28 }
   0x9   :  { %600 = vmatpush.bf16.msra.mxu1 %v3363_v17  ;;  %689 = vmatpush.bf16.msra.mxu2 %v3367_v21  ;;  %v3335_v33 = vor.u32 %v3758_v26, %v3332_v27  ;;  %v3302_v35 = vld [vmem:[%s5280_s1 + $0xe0] sm:$0xf]  ;;  %v3754_v36 = vld [vmem:[%s5280_s1 + $0xf8] sm:$0xf0]  ;;  %v3751_v37 = vld [vmem:[%s5280_s1 + $0xe4] sm:$0xf]  ;;  %v3343_v38 = vor.u32 %v3759_v31, %v3340_v32 }
   0xa   :  { %778 = vmatpush.bf16.msra.mxu3 %v3371_v25  ;;  %v3304_v39 = vld [vmem:[%s5280_s1 + $0xfc] sm:$0xf0]  ;;  %v3310_v40 = vld [vmem:[%s5280_s1 + $0xe8] sm:$0xf]  ;;  %v3755_v41 = vld [vmem:[%s5280_s1 + $0x100] sm:$0xf0]  ;;  %v3303_v44 = vor.u32 %v3754_v36, %v3302_v35 }
   0xb   :  { %v3752_v42 = vld [vmem:[%s5280_s1 + $0xec] sm:$0xf]  ;;  %v3312_v43 = vld [vmem:[%s5280_s1 + $0x104] sm:$0xf0]  ;;  %v3307_v45 = vor.u32 %v3751_v37, %v3304_v39  ;;  %v3311_v46 = vor.u32 %v3755_v41, %v3310_v40  ;;  %v3747_v48 = vld [vmem:[%s5280_s1 + $0xc0] sm:$0xf0] }
   0xc   :  { %512 = vmatpush.bf16.msra.mxu0 %v3331_v29  ;;  %v3274_v47 = vld [vmem:[%s5280_s1 + $0xa8] sm:$0xf]  ;;  %v3744_v49 = vld [vmem:[%s5280_s1 + $0xac] sm:$0xf]  ;;  %v3315_v50 = vor.u32 %v3752_v42, %v3312_v43  ;;  %v3282_v52 = vld [vmem:[%s5280_s1 + $0xb0] sm:$0xf] }
   0xd   :  { %601 = vmatpush.bf16.msra.mxu1 %v3335_v33  ;;  %690 = vmatpush.bf16.msra.mxu2 %v3339_v34  ;;  %v3276_v51 = vld [vmem:[%s5280_s1 + $0xc4] sm:$0xf0]  ;;  %v3748_v53 = vld [vmem:[%s5280_s1 + $0xc8] sm:$0xf0]  ;;  %v3745_v54 = vld [vmem:[%s5280_s1 + $0xb4] sm:$0xf]  ;;  %v3275_v56 = vor.u32 %v3747_v48, %v3274_v47 }
   0xe   :  { %779 = vmatpush.bf16.msra.mxu3 %v3343_v38  ;;  %v3284_v55 = vld [vmem:[%s5280_s1 + $0xcc] sm:$0xf0]  ;;  %v3279_v57 = vor.u32 %v3744_v49, %v3276_v51  ;;  %v3283_v58 = vor.u32 %v3748_v53, %v3282_v52  ;;  %v3740_v60 = vld [vmem:[%s5280_s1 + $0x88] sm:$0xf0]  ;;  %v3737_v61 = vld [vmem:[%s5280_s1 + $0x74] sm:$0xf] }
   0xf   :  { %v3246_v59 = vld [vmem:[%s5280_s1 + $0x70] sm:$0xf]  ;;  %v3287_v62 = vor.u32 %v3745_v54, %v3284_v55  ;;  %v3254_v0 = vld [vmem:[%s5280_s1 + $0x78] sm:$0xf]  ;;  %v3741_v1 = vld [vmem:[%s5280_s1 + $0x90] sm:$0xf0] }
  0x10   :  { %513 = vmatpush.bf16.msra.mxu0 %v3303_v44  ;;  %v3248_v63 = vld [vmem:[%s5280_s1 + $0x8c] sm:$0xf0]  ;;  %v3738_v2 = vld [vmem:[%s5280_s1 + $0x7c] sm:$0xf]  ;;  %v3256_v3 = vld [vmem:[%s5280_s1 + $0x94] sm:$0xf0]  ;;  %v3247_v4 = vor.u32 %v3740_v60, %v3246_v59  ;;  %v3255_v6 = vor.u32 %v3741_v1, %v3254_v0 }
  0x11   :  { %602 = vmatpush.bf16.msra.mxu1 %v3307_v45  ;;  %691 = vmatpush.bf16.msra.mxu2 %v3311_v46  ;;  %v3251_v5 = vor.u32 %v3737_v61, %v3248_v63  ;;  %v3218_v7 = vld [vmem:[%s5280_s1 + $0x38] sm:$0xf]  ;;  %v3733_v8 = vld [vmem:[%s5280_s1 + $0x50] sm:$0xf0]  ;;  %v3730_v9 = vld [vmem:[%s5280_s1 + $0x3c] sm:$0xf]  ;;  %v3259_v10 = vor.u32 %v3738_v2, %v3256_v3 }
  0x12   :  { %780 = vmatpush.bf16.msra.mxu3 %v3315_v50  ;;  %v3220_v11 = vld [vmem:[%s5280_s1 + $0x54] sm:$0xf0]  ;;  %v3226_v12 = vld [vmem:[%s5280_s1 + $0x40] sm:$0xf]  ;;  %v3734_v13 = vld [vmem:[%s5280_s1 + $0x58] sm:$0xf0]  ;;  %v3219_v16 = vor.u32 %v3733_v8, %v3218_v7 }
  0x13   :  { %v3731_v14 = vld [vmem:[%s5280_s1 + $0x44] sm:$0xf]  ;;  %v3228_v15 = vld [vmem:[%s5280_s1 + $0x5c] sm:$0xf0]  ;;  %v3223_v17 = vor.u32 %v3730_v9, %v3220_v11  ;;  %v3227_v18 = vor.u32 %v3734_v13, %v3226_v12  ;;  %v3726_v20 = vld [vmem:[%s5280_s1 + $0x18] sm:$0xf0] }
  0x14   :  { %514 = vmatpush.bf16.msra.mxu0 %v3275_v56  ;;  %v3190_v19 = vld [vmem:[%s5280_s1] sm:$0xf]  ;;  %v3723_v21 = vld [vmem:[%s5280_s1 + $0x4] sm:$0xf]  ;;  %v3231_v22 = vor.u32 %v3731_v14, %v3228_v15  ;;  %v3198_v24 = vld [vmem:[%s5280_s1 + $0x8] sm:$0xf] }
  0x15   :  { %603 = vmatpush.bf16.msra.mxu1 %v3279_v57  ;;  %692 = vmatpush.bf16.msra.mxu2 %v3283_v58  ;;  %v3192_v23 = vld [vmem:[%s5280_s1 + $0x1c] sm:$0xf0]  ;;  %v3727_v25 = vld [vmem:[%s5280_s1 + $0x20] sm:$0xf0]  ;;  %v3724_v26 = vld [vmem:[%s5280_s1 + $0xc] sm:$0xf]  ;;  %v3191_v28 = vor.u32 %v3726_v20, %v3190_v19 }
  0x16   :  { %781 = vmatpush.bf16.msra.mxu3 %v3287_v62  ;;  %v3200_v27 = vld [vmem:[%s5280_s1 + $0x24] sm:$0xf0]  ;;  %v3195_v29 = vor.u32 %v3723_v21, %v3192_v23  ;;  %v3199_v30 = vor.u32 %v3727_v25, %v3198_v24  ;;  %v4108_v32 = vld [vmem:[%s5281_s0] sm:$0xff]  ;;  %v4126_v34 = vld [vmem:[%s5281_s0 + $0x10] sm:$0xff]  ;;  %vm2241_vm11 = vcmask 15360  }
  0x17   :  { %v3203_v31 = vor.u32 %v3724_v26, %v3200_v27  ;;  %v4117_v33 = vld [vmem:[%s5281_s0 + $0x8] sm:$0xff]  ;;  %v4135_v35 = vld [vmem:[%s5281_s0 + $0x18] sm:$0xff]  ;;  %v4144_v36 = vld [vmem:[%s5281_s0 + $0x20] sm:$0xff] }
  0x18   :  { %515 = vmatpush.bf16.msra.mxu0 %v3247_v4  ;;  %v4153_v37 = vld [vmem:[%s5281_s0 + $0x28] sm:$0xff]  ;;  %v4162_v38 = vld [vmem:[%s5281_s0 + $0x30] sm:$0xff]  ;;  %v4171_v39 = vld [vmem:[%s5281_s0 + $0x38] sm:$0xff] }
  0x19   :  { %604 = vmatpush.bf16.msra.mxu1 %v3251_v5  ;;  %693 = vmatpush.bf16.msra.mxu2 %v3255_v6  ;;  %v4180_v40 = vld [vmem:[%s5281_s0 + $0x40] sm:$0xff]  ;;  %v4189_v55 = vld [vmem:[%s5281_s0 + $0x48] sm:$0xff] }
  0x1a   :  { %782 = vmatpush.bf16.msra.mxu3 %v3259_v10 }
  0x1c   :  { %516 = vmatpush.bf16.msra.mxu0 %v3219_v16 }
  0x1d   :  { %605 = vmatpush.bf16.msra.mxu1 %v3223_v17  ;;  %694 = vmatpush.bf16.msra.mxu2 %v3227_v18  ;;  %v4198_v17 = vld [vmem:[%s5281_s0 + $0x50] sm:$0xff] }
  0x1e   :  { %783 = vmatpush.bf16.msra.mxu3 %v3231_v22 }
  0x20   :  { %517 = vmatpush.bf16.msra.mxu0 %v3191_v28 }
  0x21   :  { %606 = vmatpush.bf16.msra.mxu1 %v3195_v29  ;;  %695 = vmatpush.bf16.msra.mxu2 %v3199_v30 }
  0x22   :  { %784 = vmatpush.bf16.msra.mxu3 %v3203_v31 }
  0x23   :  { %518 = vmatmul.bf16.vlgmr.msra.gmra.mxu0 %v4108_v32 }
  0x24   :  { %607 = vmatmul.bf16.vlgmr.msra.gmra.mxu1 %v4108_v32  ;;  %696 = vmatmul.bf16.vlgmr.msra.gmra.mxu2 %v4108_v32 }
  0x25   :  { %785 = vmatmul.bf16.vlgmr.msra.gmra.mxu3 %v4108_v32 }
  0x33   :  { %523 = vmatmul.bf16.gmra.mxu0 %v4117_v33 }
  0x34   :  { %612 = vmatmul.bf16.gmra.mxu1 %v4117_v33  ;;  %701 = vmatmul.bf16.gmra.mxu2 %v4117_v33 }
  0x35   :  { %790 = vmatmul.bf16.gmra.mxu3 %v4117_v33 }
  0x43   :  { %528 = vmatmul.bf16.gmra.mxu0 %v4126_v34 }
  0x44   :  { %617 = vmatmul.bf16.gmra.mxu1 %v4126_v34  ;;  %706 = vmatmul.bf16.gmra.mxu2 %v4126_v34 }
  0x45   :  { %795 = vmatmul.bf16.gmra.mxu3 %v4126_v34 }
  0x53   :  { %533 = vmatmul.bf16.gmra.mxu0 %v4135_v35 }
  0x54   :  { %622 = vmatmul.bf16.gmra.mxu1 %v4135_v35  ;;  %711 = vmatmul.bf16.gmra.mxu2 %v4135_v35 }
  0x55   :  { %800 = vmatmul.bf16.gmra.mxu3 %v4135_v35 }
  0x63   :  { %538 = vmatmul.bf16.gmra.mxu0 %v4144_v36 }
  0x64   :  { %627 = vmatmul.bf16.gmra.mxu1 %v4144_v36  ;;  %716 = vmatmul.bf16.gmra.mxu2 %v4144_v36 }
  0x65   :  { %805 = vmatmul.bf16.gmra.mxu3 %v4144_v36 }
  0x73   :  { %543 = vmatmul.bf16.gmra.mxu0 %v4153_v37 }
  0x74   :  { %632 = vmatmul.bf16.gmra.mxu1 %v4153_v37  ;;  %721 = vmatmul.bf16.gmra.mxu2 %v4153_v37 }
  0x75   :  { %810 = vmatmul.bf16.gmra.mxu3 %v4153_v37 }
  0x83   :  { %548 = vmatmul.bf16.gmra.mxu0 %v4162_v38 }
  0x84   :  { %637 = vmatmul.bf16.gmra.mxu1 %v4162_v38  ;;  %726 = vmatmul.bf16.gmra.mxu2 %v4162_v38 }
  0x85   :  { %815 = vmatmul.bf16.gmra.mxu3 %v4162_v38 }
  0x93   :  { %553 = vmatmul.bf16.gmra.mxu0 %v4171_v39 }
  0x94   :  { %642 = vmatmul.bf16.gmra.mxu1 %v4171_v39  ;;  %731 = vmatmul.bf16.gmra.mxu2 %v4171_v39 }
  0x95   :  { %820 = vmatmul.bf16.gmra.mxu3 %v4171_v39 }
  0xa0   :  { %v519_v41 = vpop.f32.mrf.mxu0 }
  0xa1   :  { %v608_v42 = vpop.f32.mrf.mxu1  ;;  %v1133_v46 = vmax.f32 %v519_v41, 0.0 }
  0xa2   :  { %v1134_v49 = vmax.f32 %v608_v42, 0.0 }
  0xa3   :  { %558 = vmatmul.bf16.gmra.mxu0 %v4180_v40 }
  0xa4   :  { %647 = vmatmul.bf16.gmra.mxu1 %v4180_v40  ;;  %736 = vmatmul.bf16.gmra.mxu2 %v4180_v40 }
  0xa5   :  { %825 = vmatmul.bf16.gmra.mxu3 %v4180_v40 }
  0xa7   :  { %v697_v43 = vpop.f32.mrf.mxu2 }
  0xa8   :  { %v521_v44 = vpop.f32.mrf.mxu0  ;;  %v786_v45 = vpop.f32.mrf.mxu3  ;;  %v1135_v56 = vmax.f32 %v697_v43, 0.0 }
  0xa9   :  { %v1140_v47 = vmax.f32 %v521_v44, 0.0  ;;  %v610_v48 = vpop.f32.mrf.mxu1  ;;  %v1136_v53 = vmax.f32 %v786_v45, 0.0 }
  0xaa   :  { %v1141_v50 = vmax.f32 %v610_v48, 0.0 }
  0xab   :  { %v1357_v51 = vadd.f32 %v1140_v47, %v1133_v46 }
  0xac   :  { %v1370_v52 = vadd.f32 %v1141_v50, %v1134_v49 }
  0xaf   :  { %v699_v54 = vpop.f32.mrf.mxu2 }
  0xb0   :  { %v1142_v57 = vmax.f32 %v699_v54, 0.0  ;;  %v524_v58 = vpop.f32.mrf.mxu0  ;;  %v788_v59 = vpop.f32.mrf.mxu3 }
  0xb1   :  { %v1147_v60 = vmax.f32 %v524_v58, 0.0  ;;  %v613_v61 = vpop.f32.mrf.mxu1  ;;  %v1143_v62 = vmax.f32 %v788_v59, 0.0 }
  0xb2   :  { %v1383_v63 = vadd.f32 %v1142_v57, %v1135_v56  ;;  %v1148_v0 = vmax.f32 %v613_v61, 0.0 }
  0xb3   :  { %v1358_v1 = vadd.f32 %v1357_v51, %v1147_v60  ;;  %v1396_v2 = vadd.f32 %v1143_v62, %v1136_v53  ;;  %563 = vmatmul.bf16.gmra.mxu0 %v4189_v55  ;;  %v4207_v51 = vld [vmem:[%s5281_s0 + $0x58] sm:$0xff] }
  0xb4   :  { %v1371_v3 = vadd.f32 %v1370_v52, %v1148_v0  ;;  %652 = vmatmul.bf16.gmra.mxu1 %v4189_v55  ;;  %741 = vmatmul.bf16.gmra.mxu2 %v4189_v55 }
  0xb5   :  { %830 = vmatmul.bf16.gmra.mxu3 %v4189_v55 }
  0xb7   :  { %v702_v4 = vpop.f32.mrf.mxu2 }
  0xb8   :  { %v1149_v5 = vmax.f32 %v702_v4, 0.0  ;;  %v526_v6 = vpop.f32.mrf.mxu0  ;;  %v791_v7 = vpop.f32.mrf.mxu3 }
  0xb9   :  { %v1154_v8 = vmax.f32 %v526_v6, 0.0  ;;  %v615_v9 = vpop.f32.mrf.mxu1  ;;  %v1150_v10 = vmax.f32 %v791_v7, 0.0 }
  0xba   :  { %v1384_v11 = vadd.f32 %v1383_v63, %v1149_v5  ;;  %v1155_v12 = vmax.f32 %v615_v9, 0.0 }
  0xbb   :  { %v1359_v13 = vadd.f32 %v1358_v1, %v1154_v8  ;;  %v1397_v14 = vadd.f32 %v1396_v2, %v1150_v10 }
  0xbc   :  { %v1372_v15 = vadd.f32 %v1371_v3, %v1155_v12 }
  0xbf   :  { %v704_v16 = vpop.f32.mrf.mxu2 }
  0xc0   :  { %v1156_v18 = vmax.f32 %v704_v16, 0.0  ;;  %v529_v19 = vpop.f32.mrf.mxu0  ;;  %v793_v20 = vpop.f32.mrf.mxu3 }
  0xc1   :  { %v1161_v21 = vmax.f32 %v529_v19, 0.0  ;;  %v618_v22 = vpop.f32.mrf.mxu1  ;;  %v1157_v23 = vmax.f32 %v793_v20, 0.0 }
  0xc2   :  { %v1385_v24 = vadd.f32 %v1384_v11, %v1156_v18  ;;  %v1162_v25 = vmax.f32 %v618_v22, 0.0 }
  0xc3   :  { %v1360_v26 = vadd.f32 %v1359_v13, %v1161_v21  ;;  %v1398_v27 = vadd.f32 %v1397_v14, %v1157_v23  ;;  %568 = vmatmul.bf16.gmra.mxu0 %v4198_v17  ;;  %v4220_v13 = vld [vmem:[%s5281_s0 + $0x60] sm:$0xff]  ;;  %v3402_v21 = vld [vmem:[%s5280_s1 + $0x198] sm:$0xf]  ;;  %v3777_v23 = vld [vmem:[%s5280_s1 + $0x1b0] sm:$0xf0] }
  0xc4   :  { %v1373_v28 = vadd.f32 %v1372_v15, %v1162_v25  ;;  %657 = vmatmul.bf16.gmra.mxu1 %v4198_v17  ;;  %746 = vmatmul.bf16.gmra.mxu2 %v4198_v17  ;;  %v3404_v25 = vld [vmem:[%s5280_s1 + $0x1b4] sm:$0xf0] }
  0xc5   :  { %835 = vmatmul.bf16.gmra.mxu3 %v4198_v17 }
  0xc7   :  { %v707_v29 = vpop.f32.mrf.mxu2 }
  0xc8   :  { %v1163_v30 = vmax.f32 %v707_v29, 0.0  ;;  %v531_v31 = vpop.f32.mrf.mxu0  ;;  %v796_v41 = vpop.f32.mrf.mxu3  ;;  %v3778_v29 = vld [vmem:[%s5280_s1 + $0x1b8] sm:$0xf0] }
  0xc9   :  { %v1168_v42 = vmax.f32 %v531_v31, 0.0  ;;  %v620_v43 = vpop.f32.mrf.mxu1  ;;  %v1164_v44 = vmax.f32 %v796_v41, 0.0  ;;  %v3374_v31 = vld [vmem:[%s5280_s1 + $0x160] sm:$0xf]  ;;  %v3770_v41 = vld [vmem:[%s5280_s1 + $0x178] sm:$0xf0] }
  0xca   :  { %v1386_v45 = vadd.f32 %v1385_v24, %v1163_v30  ;;  %v1169_v46 = vmax.f32 %v620_v43, 0.0  ;;  %v3774_v24 = vld [vmem:[%s5280_s1 + $0x19c] sm:$0xf]  ;;  %v3375_v43 = vor.u32 %v3770_v41, %v3374_v31 }
  0xcb   :  { %v1361_v47 = vadd.f32 %v1360_v26, %v1168_v42  ;;  %v1399_v48 = vadd.f32 %v1398_v27, %v1164_v44  ;;  %v3403_v26 = vor.u32 %v3777_v23, %v3402_v21  ;;  %v3407_v27 = vor.u32 %v3774_v24, %v3404_v25  ;;  %v3767_v44 = vld [vmem:[%s5280_s1 + $0x164] sm:$0xf] }
  0xcc   :  { %v1374_v49 = vadd.f32 %v1373_v28, %v1169_v46  ;;  %v3410_v28 = vld [vmem:[%s5280_s1 + $0x1a0] sm:$0xf]  ;;  %v3382_v46 = vld [vmem:[%s5280_s1 + $0x168] sm:$0xf] }
  0xcd   :  { %v3411_v30 = vor.u32 %v3778_v29, %v3410_v28  ;;  %866 = vmatpush.bf16.msrb.mxu0 %v3403_v26  ;;  %955 = vmatpush.bf16.msrb.mxu1 %v3407_v27 }
  0xcf   :  { %v709_v50 = vpop.f32.mrf.mxu2  ;;  %1044 = vmatpush.bf16.msrb.mxu2 %v3411_v30 }
  0xd0   :  { %v1170_v52 = vmax.f32 %v709_v50, 0.0  ;;  %v534_v53 = vpop.f32.mrf.mxu0  ;;  %v798_v54 = vpop.f32.mrf.mxu3  ;;  %v3771_v50 = vld [vmem:[%s5280_s1 + $0x180] sm:$0xf0] }
  0xd1   :  { %v1175_v56 = vmax.f32 %v534_v53, 0.0  ;;  %v623_v57 = vpop.f32.mrf.mxu1  ;;  %v1171_v58 = vmax.f32 %v798_v54, 0.0  ;;  %867 = vmatpush.bf16.msrb.mxu0 %v3375_v43  ;;  %v3290_v43 = vld [vmem:[%s5280_s1 + $0xb8] sm:$0xf] }
  0xd2   :  { %v1387_v59 = vadd.f32 %v1386_v45, %v1170_v52  ;;  %v1176_v60 = vmax.f32 %v623_v57, 0.0  ;;  %v3376_v45 = vld [vmem:[%s5280_s1 + $0x17c] sm:$0xf0] }
  0xd3   :  { %v1362_v61 = vadd.f32 %v1361_v47, %v1175_v56  ;;  %v1400_v62 = vadd.f32 %v1399_v48, %v1171_v58  ;;  %573 = vmatmul.bf16.gmra.mxu0 %v4207_v51  ;;  %v3383_v58 = vor.u32 %v3771_v50, %v3382_v46  ;;  %v3746_v46 = vld [vmem:[%s5280_s1 + $0xbc] sm:$0xf] }
  0xd4   :  { %v1375_v63 = vadd.f32 %v1374_v49, %v1176_v60  ;;  %662 = vmatmul.bf16.gmra.mxu1 %v4207_v51  ;;  %751 = vmatmul.bf16.gmra.mxu2 %v4207_v51  ;;  %v3379_v49 = vor.u32 %v3767_v44, %v3376_v45  ;;  %v3763_v60 = vld [vmem:[%s5280_s1 + $0x140] sm:$0xf0] }
  0xd5   :  { %840 = vmatmul.bf16.gmra.mxu3 %v4207_v51  ;;  %1045 = vmatpush.bf16.msrb.mxu2 %v3383_v58 }
  0xd6   :  { %956 = vmatpush.bf16.msrb.mxu1 %v3379_v49 }
  0xd7   :  { %v712_v0 = vpop.f32.mrf.mxu2 }
  0xd8   :  { %v1177_v1 = vmax.f32 %v712_v0, 0.0  ;;  %v536_v2 = vpop.f32.mrf.mxu0  ;;  %v801_v3 = vpop.f32.mrf.mxu3  ;;  %v3348_v0 = vld [vmem:[%s5280_s1 + $0x144] sm:$0xf0] }
  0xd9   :  { %v1182_v4 = vmax.f32 %v536_v2, 0.0  ;;  %v625_v5 = vpop.f32.mrf.mxu1  ;;  %v1178_v6 = vmax.f32 %v801_v3, 0.0 }
  0xda   :  { %v1388_v7 = vadd.f32 %v1387_v59, %v1177_v1  ;;  %v1183_v8 = vmax.f32 %v625_v5, 0.0  ;;  %v3346_v59 = vld [vmem:[%s5280_s1 + $0x128] sm:$0xf]  ;;  %v3354_v1 = vld [vmem:[%s5280_s1 + $0x130] sm:$0xf] }
  0xdb   :  { %v4213_v9 = vadd.f32 %v1362_v61, %v1182_v4  ;;  %v1401_v10 = vadd.f32 %v1400_v62, %v1178_v6  ;;  %v3347_v62 = vor.u32 %v3763_v60, %v3346_v59  ;;  %v3764_v4 = vld [vmem:[%s5280_s1 + $0x148] sm:$0xf0] }
  0xdc   :  { %v4215_v11 = vadd.f32 %v1375_v63, %v1183_v8  ;;  %v3760_v63 = vld [vmem:[%s5280_s1 + $0x12c] sm:$0xf]  ;;  %v3355_v6 = vor.u32 %v3764_v4, %v3354_v1 }
  0xdd   :  { %v3351_v3 = vor.u32 %v3760_v63, %v3348_v0  ;;  %v4289_v5 = vld [vmem:[%s5281_s0 + $0x68] sm:$0xff]  ;;  %868 = vmatpush.bf16.msrb.mxu0 %v3347_v62  ;;  %v3743_v63 = vld [vmem:[%s5280_s1 + $0xa0] sm:$0xf0] }
  0xde   :  { %v3756_v8 = vld [vmem:[%s5280_s1 + $0x108] sm:$0xf0]  ;;  %1046 = vmatpush.bf16.msrb.mxu2 %v3355_v6  ;;  %v3270_v62 = vld [vmem:[%s5280_s1 + $0x88] sm:$0xf] }
  0xdf   :  { %v714_v12 = vpop.f32.mrf.mxu2  ;;  %957 = vmatpush.bf16.msrb.mxu1 %v3351_v3 }
  0xe0   :  { %v1184_v14 = vmax.f32 %v714_v12, 0.0  ;;  %v539_v15 = vpop.f32.mrf.mxu0  ;;  %v803_v16 = vpop.f32.mrf.mxu3 }
  0xe1   :  { %v628_v18 = vpop.f32.mrf.mxu1  ;;  %v1185_v19 = vmax.f32 %v803_v16, 0.0  ;;  %v1189_v52 = vmax.f32 %v539_v15, 0.0  ;;  %v3320_v15 = vld [vmem:[%s5280_s1 + $0x10c] sm:$0xf0]  ;;  %v3326_v16 = vld [vmem:[%s5280_s1 + $0xf8] sm:$0xf] }
  0xe2   :  { %v4222_v20 = vadd.f32 %v1388_v7, %v1184_v14  ;;  %v1190_v56 = vmax.f32 %v628_v18, 0.0  ;;  %v3318_v7 = vld [vmem:[%s5280_s1 + $0xf0] sm:$0xf]  ;;  %v3757_v18 = vld [vmem:[%s5280_s1 + $0x110] sm:$0xf0] }
  0xe3   :  { %v4227_v22 = vadd.f32 %v1401_v10, %v1185_v19  ;;  %578 = vmatmul.bf16.gmra.mxu0 %v4220_v13  ;;  %v3753_v10 = vld [vmem:[%s5280_s1 + $0xf4] sm:$0xf]  ;;  %v3319_v14 = vor.u32 %v3756_v8, %v3318_v7  ;;  %v3327_v29 = vor.u32 %v3757_v18, %v3326_v16  ;;  %v3271_v8 = vor.u32 %v3743_v63, %v3270_v62 }
  0xe4   :  { %667 = vmatmul.bf16.gmra.mxu1 %v4220_v13  ;;  %756 = vmatmul.bf16.gmra.mxu2 %v4220_v13  ;;  %v3323_v25 = vor.u32 %v3753_v10, %v3320_v15  ;;  %v3735_v15 = vld [vmem:[%s5280_s1 + $0x60] sm:$0xf0] }
  0xe5   :  { %845 = vmatmul.bf16.gmra.mxu3 %v4220_v13  ;;  %869 = vmatpush.bf16.msrb.mxu0 %v3319_v14  ;;  %v3234_v14 = vld [vmem:[%s5280_s1 + $0x48] sm:$0xf] }
  0xe6   :  { %958 = vmatpush.bf16.msrb.mxu1 %v3323_v25  ;;  %1047 = vmatpush.bf16.msrb.mxu2 %v3327_v29 }
  0xe7   :  { %v717_v42 = vpop.f32.mrf.mxu2 }
  0xe8   :  { %v541_v47 = vpop.f32.mrf.mxu0  ;;  %v4263_v48 = vpop.f32.mrf.mxu3  ;;  %v1191_v19 = vmax.f32 %v717_v42, 0.0  ;;  %v3749_v42 = vld [vmem:[%s5280_s1 + $0xd0] sm:$0xf0] }
  0xe9   :  { %v1196_v53 = vmax.f32 %v541_v47, 0.0  ;;  %v630_v54 = vpop.f32.mrf.mxu1  ;;  %v1192_v26 = vmax.f32 %v4263_v48, 0.0  ;;  %v3291_v45 = vor.u32 %v3749_v42, %v3290_v43  ;;  %v3292_v47 = vld [vmem:[%s5280_s1 + $0xd4] sm:$0xf0]  ;;  %v3298_v48 = vld [vmem:[%s5280_s1 + $0xc0] sm:$0xf] }
  0xea   :  { %v1197_v57 = vmax.f32 %v630_v54, 0.0  ;;  %v3295_v50 = vor.u32 %v3746_v46, %v3292_v47  ;;  %v3262_v54 = vld [vmem:[%s5280_s1 + $0x80] sm:$0xf]  ;;  %v3729_v46 = vld [vmem:[%s5280_s1 + $0x30] sm:$0xf0] }
  0xeb   :  { %v1448_v61 = vadd.f32 %v1196_v53, %v1189_v52  ;;  %v3750_v52 = vld [vmem:[%s5280_s1 + $0xd8] sm:$0xf0]  ;;  %870 = vmatpush.bf16.msrb.mxu0 %v3291_v45  ;;  %v3214_v45 = vld [vmem:[%s5280_s1 + $0x18] sm:$0xf] }
  0xec   :  { %v1461_v2 = vadd.f32 %v1197_v57, %v1190_v56  ;;  %v3299_v53 = vor.u32 %v3750_v52, %v3298_v48  ;;  %959 = vmatpush.bf16.msrb.mxu1 %v3295_v50  ;;  %v3742_v56 = vld [vmem:[%s5280_s1 + $0x98] sm:$0xf0]  ;;  %v3739_v57 = vld [vmem:[%s5280_s1 + $0x84] sm:$0xf] }
  0xed   :  { %v3263_v60 = vor.u32 %v3742_v56, %v3262_v54  ;;  %v3215_v54 = vor.u32 %v3729_v46, %v3214_v45 }
  0xee   :  { %1048 = vmatpush.bf16.msrb.mxu2 %v3299_v53 }
  0xef   :  { %v719_v12 = vpop.f32.mrf.mxu2  ;;  %871 = vmatpush.bf16.msrb.mxu0 %v3263_v60 }
  0xf0   :  { %v1198_v21 = vmax.f32 %v719_v12, 0.0  ;;  %v544_v23 = vpop.f32.mrf.mxu0  ;;  %v808_v24 = vpop.f32.mrf.mxu3 }
  0xf1   :  { %v1203_v27 = vmax.f32 %v544_v23, 0.0  ;;  %v633_v28 = vpop.f32.mrf.mxu1  ;;  %v1199_v41 = vmax.f32 %v808_v24, 0.0  ;;  %v3236_v23 = vld [vmem:[%s5280_s1 + $0x64] sm:$0xf0]  ;;  %v3242_v24 = vld [vmem:[%s5280_s1 + $0x50] sm:$0xf] }
  0xf2   :  { %v1474_v30 = vadd.f32 %v1198_v21, %v1191_v19  ;;  %v1204_v31 = vmax.f32 %v633_v28, 0.0  ;;  %v3235_v19 = vor.u32 %v3735_v15, %v3234_v14  ;;  %v3732_v21 = vld [vmem:[%s5280_s1 + $0x4c] sm:$0xf]  ;;  %v4371_v28 = vld [vmem:[%s5281_s0 + $0x70] sm:$0xff]  ;;  %1049 = vmatpush.bf16.msrb.mxu2 %v3271_v8  ;;  %v4398_v15 = vld [vmem:[%s5281_s0 + $0x78] sm:$0xff] }
  0xf3   :  { %v1449_v44 = vadd.f32 %v1448_v61, %v1203_v27  ;;  %583 = vmatmul.bf16.gmra.mxu0 %v4289_v5  ;;  %v1487_v58 = vadd.f32 %v1199_v41, %v1192_v26  ;;  %v3264_v61 = vld [vmem:[%s5280_s1 + $0x9c] sm:$0xf0]  ;;  %v3239_v26 = vor.u32 %v3732_v21, %v3236_v23  ;;  %v3736_v27 = vld [vmem:[%s5280_s1 + $0x68] sm:$0xf0]  ;;  %v3725_v41 = vld [vmem:[%s5280_s1 + $0x14] sm:$0xf] }
  0xf4   :  { %v1462_v49 = vadd.f32 %v1461_v2, %v1204_v31  ;;  %672 = vmatmul.bf16.gmra.mxu1 %v4289_v5  ;;  %761 = vmatmul.bf16.gmra.mxu2 %v4289_v5  ;;  %v3267_v3 = vor.u32 %v3739_v57, %v3264_v61  ;;  %v3243_v29 = vor.u32 %v3736_v27, %v3242_v24  ;;  %v3728_v31 = vld [vmem:[%s5280_s1 + $0x28] sm:$0xf0] }
  0xf5   :  { %850 = vmatmul.bf16.gmra.mxu3 %v4289_v5  ;;  %872 = vmatpush.bf16.msrb.mxu0 %v3235_v19 }
  0xf6   :  { %960 = vmatpush.bf16.msrb.mxu1 %v3267_v3  ;;  %1050 = vmatpush.bf16.msrb.mxu2 %v3243_v29 }
  0xf7   :  { %v722_v59 = vpop.f32.mrf.mxu2 }
  0xf8   :  { %v1205_v0 = vmax.f32 %v722_v59, 0.0  ;;  %v546_v1 = vpop.f32.mrf.mxu0  ;;  %v811_v2 = vpop.f32.mrf.mxu3 }
  0xf9   :  { %v1210_v4 = vmax.f32 %v546_v1, 0.0  ;;  %v635_v6 = vpop.f32.mrf.mxu1  ;;  %v1206_v7 = vmax.f32 %v811_v2, 0.0 }
  0xfa   :  { %v1475_v10 = vadd.f32 %v1474_v30, %v1205_v0  ;;  %v1211_v12 = vmax.f32 %v635_v6, 0.0  ;;  %961 = vmatpush.bf16.msrb.mxu1 %v3239_v26  ;;  %v3206_v30 = vld [vmem:[%s5280_s1 + $0x10] sm:$0xf]  ;;  %1051 = vmatpush.bf16.msrb.mxu2 %v3215_v54 }
  0xfb   :  { %v1450_v16 = vadd.f32 %v1449_v44, %v1210_v4  ;;  %v1488_v18 = vadd.f32 %v1487_v58, %v1206_v7  ;;  %v3207_v42 = vor.u32 %v3728_v31, %v3206_v30  ;;  %v3208_v44 = vld [vmem:[%s5280_s1 + $0x2c] sm:$0xf0] }
  0xfc   :  { %v1463_v25 = vadd.f32 %v1462_v49, %v1211_v12  ;;  %v3211_v50 = vor.u32 %v3725_v41, %v3208_v44 }
  0xfd   :  { %873 = vmatpush.bf16.msrb.mxu0 %v3207_v42 }
  0xfe   :  { %962 = vmatpush.bf16.msrb.mxu1 %v3211_v50 }
  0xff   :  { %v724_v43 = vpop.f32.mrf.mxu2 }
 0x100   :  { %v1212_v47 = vmax.f32 %v724_v43, 0.0  ;;  %v549_v48 = vpop.f32.mrf.mxu0  ;;  %v813_v49 = vpop.f32.mrf.mxu3 }
 0x101   :  { %v1217_v52 = vmax.f32 %v549_v48, 0.0  ;;  %v638_v53 = vpop.f32.mrf.mxu1  ;;  %v1213_v59 = vmax.f32 %v813_v49, 0.0 }
 0x102   :  { %v1476_v56 = vadd.f32 %v1475_v10, %v1212_v47  ;;  %v1218_v57 = vmax.f32 %v638_v53, 0.0 }
 0x103   :  { %v1451_v58 = vadd.f32 %v1450_v16, %v1217_v52  ;;  %588 = vmatmul.bf16.gmra.mxu0 %v4371_v28  ;;  %v1489_v61 = vadd.f32 %v1488_v18, %v1213_v59 }
 0x104   :  { %v1464_v60 = vadd.f32 %v1463_v25, %v1218_v57  ;;  %677 = vmatmul.bf16.gmra.mxu1 %v4371_v28  ;;  %766 = vmatmul.bf16.gmra.mxu2 %v4371_v28 }
 0x105   :  { %855 = vmatmul.bf16.gmra.mxu3 %v4371_v28 }
 0x107   :  { %v727_v62 = vpop.f32.mrf.mxu2 }
 0x108   :  { %v1219_v63 = vmax.f32 %v727_v62, 0.0  ;;  %v551_v0 = vpop.f32.mrf.mxu0  ;;  %v816_v1 = vpop.f32.mrf.mxu3 }
 0x109   :  { %v1224_v2 = vmax.f32 %v551_v0, 0.0  ;;  %v640_v3 = vpop.f32.mrf.mxu1  ;;  %v1220_v4 = vmax.f32 %v816_v1, 0.0 }
 0x10a   :  { %v1477_v6 = vadd.f32 %v1476_v56, %v1219_v63  ;;  %v1225_v7 = vmax.f32 %v640_v3, 0.0 }
 0x10b   :  { %v1452_v8 = vadd.f32 %v1451_v58, %v1224_v2  ;;  %v1490_v10 = vadd.f32 %v1489_v61, %v1220_v4 }
 0x10c   :  { %v1465_v12 = vadd.f32 %v1464_v60, %v1225_v7 }
 0x10f   :  { %v729_v14 = vpop.f32.mrf.mxu2 }
 0x110   :  { %v1226_v16 = vmax.f32 %v729_v14, 0.0  ;;  %v554_v18 = vpop.f32.mrf.mxu0  ;;  %v818_v19 = vpop.f32.mrf.mxu3 }
 0x111   :  { %v1231_v21 = vmax.f32 %v554_v18, 0.0  ;;  %v643_v23 = vpop.f32.mrf.mxu1  ;;  %v1227_v27 = vmax.f32 %v818_v19, 0.0 }
 0x112   :  { %v1478_v24 = vadd.f32 %v1477_v6, %v1226_v16  ;;  %v1232_v25 = vmax.f32 %v643_v23, 0.0 }
 0x113   :  { %v1453_v26 = vadd.f32 %v1452_v8, %v1231_v21  ;;  %593 = vmatmul.bf16.gmra.mxu0 %v4398_v15  ;;  %v1491_v30 = vadd.f32 %v1490_v10, %v1227_v27 }
 0x114   :  { %v1466_v29 = vadd.f32 %v1465_v12, %v1232_v25  ;;  %682 = vmatmul.bf16.gmra.mxu1 %v4398_v15  ;;  %771 = vmatmul.bf16.gmra.mxu2 %v4398_v15 }
 0x115   :  { %860 = vmatmul.bf16.gmra.mxu3 %v4398_v15 }
 0x117   :  { %v732_v31 = vpop.f32.mrf.mxu2 }
 0x118   :  { %v1233_v41 = vmax.f32 %v732_v31, 0.0  ;;  %v556_v43 = vpop.f32.mrf.mxu0  ;;  %v821_v42 = vpop.f32.mrf.mxu3 }
 0x119   :  { %v1238_v44 = vmax.f32 %v556_v43, 0.0  ;;  %v645_v45 = vpop.f32.mrf.mxu1  ;;  %v1234_v46 = vmax.f32 %v821_v42, 0.0 }
 0x11a   :  { %v1479_v47 = vadd.f32 %v1478_v24, %v1233_v41  ;;  %v1239_v48 = vmax.f32 %v645_v45, 0.0 }
 0x11b   :  { %v4404_v49 = vadd.f32 %v1453_v26, %v1238_v44  ;;  %v4406_v50 = vadd.f32 %v1491_v30, %v1234_v46 }
 0x11c   :  { %v4408_v52 = vadd.f32 %v1466_v29, %v1239_v48 }
 0x11f   :  { %v734_v53 = vpop.f32.mrf.mxu2 }
 0x120   :  { %v1240_v54 = vmax.f32 %v734_v53, 0.0  ;;  %v559_v56 = vpop.f32.mrf.mxu0  ;;  %v4410_v57 = vpop.f32.mrf.mxu3 }
 0x121   :  { %v648_v58 = vpop.f32.mrf.mxu1  ;;  %v1245_v63 = vmax.f32 %v559_v56, 0.0 }
 0x122   :  { %v4412_v59 = vadd.f32 %v1479_v47, %v1240_v54  ;;  %v1246_v2 = vmax.f32 %v648_v58, 0.0 }
 0x123   :  { %874 = vmatmul.bf16.vlgmr.msrb.gmra.mxu0 %v4108_v32 }
 0x124   :  { %963 = vmatmul.bf16.vlgmr.msrb.gmra.mxu1 %v4108_v32  ;;  %1052 = vmatmul.bf16.vlgmr.msrb.gmra.mxu2 %v4108_v32 }
 0x127   :  { %v737_v60 = vpop.f32.mrf.mxu2 }
 0x128   :  { %v561_v61 = vpop.f32.mrf.mxu0  ;;  %v826_v62 = vpop.f32.mrf.mxu3  ;;  %v1247_v8 = vmax.f32 %v737_v60, 0.0 }
 0x129   :  { %v1252_v0 = vmax.f32 %v561_v61, 0.0  ;;  %v650_v1 = vpop.f32.mrf.mxu1  ;;  %v1248_v32 = vmax.f32 %v826_v62, 0.0 }
 0x12a   :  { %v1253_v3 = vmax.f32 %v650_v1, 0.0 }
 0x12b   :  { %v1539_v4 = vadd.f32 %v1252_v0, %v1245_v63 }
 0x12c   :  { %v1552_v6 = vadd.f32 %v1253_v3, %v1246_v2 }
 0x12f   :  { %v739_v7 = vpop.f32.mrf.mxu2 }
 0x130   :  { %v1254_v10 = vmax.f32 %v739_v7, 0.0  ;;  %v564_v12 = vpop.f32.mrf.mxu0  ;;  %v828_v14 = vpop.f32.mrf.mxu3 }
 0x131   :  { %v1259_v16 = vmax.f32 %v564_v12, 0.0  ;;  %v653_v18 = vpop.f32.mrf.mxu1  ;;  %v1255_v24 = vmax.f32 %v828_v14, 0.0 }
 0x132   :  { %v1565_v19 = vadd.f32 %v1254_v10, %v1247_v8  ;;  %v1260_v21 = vmax.f32 %v653_v18, 0.0 }
 0x133   :  { %v1540_v23 = vadd.f32 %v1539_v4, %v1259_v16  ;;  %879 = vmatmul.bf16.gmra.mxu0 %v4117_v33  ;;  %v1578_v26 = vadd.f32 %v1255_v24, %v1248_v32 }
 0x134   :  { %v1553_v25 = vadd.f32 %v1552_v6, %v1260_v21  ;;  %968 = vmatmul.bf16.gmra.mxu1 %v4117_v33  ;;  %1057 = vmatmul.bf16.gmra.mxu2 %v4117_v33 }
 0x137   :  { %v742_v27 = vpop.f32.mrf.mxu2 }
 0x138   :  { %v1261_v29 = vmax.f32 %v742_v27, 0.0  ;;  %v566_v30 = vpop.f32.mrf.mxu0  ;;  %v831_v31 = vpop.f32.mrf.mxu3 }
 0x139   :  { %v1266_v41 = vmax.f32 %v566_v30, 0.0  ;;  %v655_v43 = vpop.f32.mrf.mxu1  ;;  %v1262_v42 = vmax.f32 %v831_v31, 0.0 }
 0x13a   :  { %v1566_v44 = vadd.f32 %v1565_v19, %v1261_v29  ;;  %v1267_v45 = vmax.f32 %v655_v43, 0.0 }
 0x13b   :  { %v1541_v46 = vadd.f32 %v1540_v23, %v1266_v41  ;;  %v1579_v47 = vadd.f32 %v1578_v26, %v1262_v42 }
 0x13c   :  { %v1554_v48 = vadd.f32 %v1553_v25, %v1267_v45 }
 0x13f   :  { %v744_v53 = vpop.f32.mrf.mxu2 }
 0x140   :  { %v1268_v54 = vmax.f32 %v744_v53, 0.0  ;;  %v569_v56 = vpop.f32.mrf.mxu0  ;;  %v833_v58 = vpop.f32.mrf.mxu3 }
 0x141   :  { %v1273_v60 = vmax.f32 %v569_v56, 0.0  ;;  %v658_v61 = vpop.f32.mrf.mxu1  ;;  %v1269_v0 = vmax.f32 %v833_v58, 0.0 }
 0x142   :  { %v1567_v33 = vadd.f32 %v1566_v44, %v1268_v54  ;;  %v1274_v62 = vmax.f32 %v658_v61, 0.0 }
 0x143   :  { %v1542_v63 = vadd.f32 %v1541_v46, %v1273_v60  ;;  %884 = vmatmul.bf16.gmra.mxu0 %v4126_v34  ;;  %v1580_v2 = vadd.f32 %v1579_v47, %v1269_v0 }
 0x144   :  { %v1555_v1 = vadd.f32 %v1554_v48, %v1274_v62  ;;  %973 = vmatmul.bf16.gmra.mxu1 %v4126_v34  ;;  %1062 = vmatmul.bf16.gmra.mxu2 %v4126_v34 }
 0x147   :  { %v747_v3 = vpop.f32.mrf.mxu2 }
 0x148   :  { %v1275_v4 = vmax.f32 %v747_v3, 0.0  ;;  %v571_v6 = vpop.f32.mrf.mxu0  ;;  %v836_v7 = vpop.f32.mrf.mxu3 }
 0x149   :  { %v1280_v8 = vmax.f32 %v571_v6, 0.0  ;;  %v660_v10 = vpop.f32.mrf.mxu1  ;;  %v1276_v12 = vmax.f32 %v836_v7, 0.0 }
 0x14a   :  { %v1568_v14 = vadd.f32 %v1567_v33, %v1275_v4  ;;  %v1281_v16 = vmax.f32 %v660_v10, 0.0 }
 0x14b   :  { %v1543_v18 = vadd.f32 %v1542_v63, %v1280_v8  ;;  %v1581_v19 = vadd.f32 %v1580_v2, %v1276_v12 }
 0x14c   :  { %v1556_v21 = vadd.f32 %v1555_v1, %v1281_v16 }
 0x14f   :  { %v749_v32 = vpop.f32.mrf.mxu2 }
 0x150   :  { %v1282_v23 = vmax.f32 %v749_v32, 0.0  ;;  %v574_v24 = vpop.f32.mrf.mxu0  ;;  %v838_v25 = vpop.f32.mrf.mxu3 }
 0x151   :  { %v1287_v26 = vmax.f32 %v574_v24, 0.0  ;;  %v663_v27 = vpop.f32.mrf.mxu1  ;;  %v1283_v31 = vmax.f32 %v838_v25, 0.0 }
 0x152   :  { %v1569_v34 = vadd.f32 %v1568_v14, %v1282_v23  ;;  %v1288_v29 = vmax.f32 %v663_v27, 0.0 }
 0x153   :  { %v1544_v30 = vadd.f32 %v1543_v18, %v1287_v26  ;;  %889 = vmatmul.bf16.gmra.mxu0 %v4135_v35  ;;  %v1582_v43 = vadd.f32 %v1581_v19, %v1283_v31 }
 0x154   :  { %v1557_v41 = vadd.f32 %v1556_v21, %v1288_v29  ;;  %978 = vmatmul.bf16.gmra.mxu1 %v4135_v35  ;;  %1067 = vmatmul.bf16.gmra.mxu2 %v4135_v35 }
 0x157   :  { %v752_v42 = vpop.f32.mrf.mxu2 }
 0x158   :  { %v1289_v44 = vmax.f32 %v752_v42, 0.0  ;;  %v576_v45 = vpop.f32.mrf.mxu0  ;;  %v841_v46 = vpop.f32.mrf.mxu3 }
 0x159   :  { %v1294_v47 = vmax.f32 %v576_v45, 0.0  ;;  %v665_v48 = vpop.f32.mrf.mxu1  ;;  %v1290_v53 = vmax.f32 %v841_v46, 0.0 }
 0x15a   :  { %v1570_v54 = vadd.f32 %v1569_v34, %v1289_v44  ;;  %v1295_v56 = vmax.f32 %v665_v48, 0.0 }
 0x15b   :  { %v4426_v58 = vadd.f32 %v1544_v30, %v1294_v47  ;;  %v4428_v60 = vadd.f32 %v1582_v43, %v1290_v53 }
 0x15c   :  { %v4430_v61 = vadd.f32 %v1557_v41, %v1295_v56 }
 0x15f   :  { %v754_v33 = vpop.f32.mrf.mxu2 }
 0x160   :  { %v1296_v62 = vmax.f32 %v754_v33, 0.0  ;;  %v579_v63 = vpop.f32.mrf.mxu0 }
 0x161   :  { %v668_v35 = vpop.f32.mrf.mxu1  ;;  %v1301_v3 = vmax.f32 %v579_v63, 0.0 }
 0x162   :  { %v4432_v0 = vadd.f32 %v1570_v54, %v1296_v62  ;;  %v1302_v7 = vmax.f32 %v668_v35, 0.0 }
 0x163   :  { %894 = vmatmul.bf16.gmra.mxu0 %v4144_v36 }
 0x164   :  { %983 = vmatmul.bf16.gmra.mxu1 %v4144_v36  ;;  %1072 = vmatmul.bf16.gmra.mxu2 %v4144_v36 }
 0x167   :  { %v757_v1 = vpop.f32.mrf.mxu2 }
 0x168   :  { %v581_v2 = vpop.f32.mrf.mxu0  ;;  %v1303_v16 = vmax.f32 %v757_v1, 0.0 }
 0x169   :  { %v1308_v4 = vmax.f32 %v581_v2, 0.0  ;;  %v670_v6 = vpop.f32.mrf.mxu1 }
 0x16a   :  { %v1309_v8 = vmax.f32 %v670_v6, 0.0 }
 0x16b   :  { %v1630_v10 = vadd.f32 %v1308_v4, %v1301_v3 }
 0x16c   :  { %v1643_v12 = vadd.f32 %v1309_v8, %v1302_v7 }
 0x16f   :  { %v759_v14 = vpop.f32.mrf.mxu2 }
 0x170   :  { %v1310_v18 = vmax.f32 %v759_v14, 0.0  ;;  %v584_v19 = vpop.f32.mrf.mxu0 }
 0x171   :  { %v1315_v21 = vmax.f32 %v584_v19, 0.0  ;;  %v673_v32 = vpop.f32.mrf.mxu1 }
 0x172   :  { %v1656_v23 = vadd.f32 %v1310_v18, %v1303_v16  ;;  %v1316_v24 = vmax.f32 %v673_v32, 0.0 }
 0x173   :  { %v1631_v25 = vadd.f32 %v1630_v10, %v1315_v21  ;;  %899 = vmatmul.bf16.gmra.mxu0 %v4153_v37 }
 0x174   :  { %v1644_v36 = vadd.f32 %v1643_v12, %v1316_v24  ;;  %988 = vmatmul.bf16.gmra.mxu1 %v4153_v37  ;;  %1077 = vmatmul.bf16.gmra.mxu2 %v4153_v37 }
 0x177   :  { %v762_v26 = vpop.f32.mrf.mxu2 }
 0x178   :  { %v1317_v27 = vmax.f32 %v762_v26, 0.0  ;;  %v586_v34 = vpop.f32.mrf.mxu0 }
 0x179   :  { %v1322_v29 = vmax.f32 %v586_v34, 0.0  ;;  %v675_v30 = vpop.f32.mrf.mxu1 }
 0x17a   :  { %v1657_v31 = vadd.f32 %v1656_v23, %v1317_v27  ;;  %v1323_v41 = vmax.f32 %v675_v30, 0.0 }
 0x17b   :  { %v1632_v43 = vadd.f32 %v1631_v25, %v1322_v29 }
 0x17c   :  { %v1645_v42 = vadd.f32 %v1644_v36, %v1323_v41 }
 0x17f   :  { %v764_v44 = vpop.f32.mrf.mxu2 }
 0x180   :  { %v1324_v45 = vmax.f32 %v764_v44, 0.0  ;;  %v589_v46 = vpop.f32.mrf.mxu0 }
 0x181   :  { %v1329_v47 = vmax.f32 %v589_v46, 0.0  ;;  %v678_v48 = vpop.f32.mrf.mxu1 }
 0x182   :  { %v1658_v53 = vadd.f32 %v1657_v31, %v1324_v45  ;;  %v1330_v54 = vmax.f32 %v678_v48, 0.0 }
 0x183   :  { %v1633_v56 = vadd.f32 %v1632_v43, %v1329_v47  ;;  %904 = vmatmul.bf16.gmra.mxu0 %v4162_v38 }
 0x184   :  { %v1646_v37 = vadd.f32 %v1645_v42, %v1330_v54  ;;  %993 = vmatmul.bf16.gmra.mxu1 %v4162_v38  ;;  %1082 = vmatmul.bf16.gmra.mxu2 %v4162_v38 }
 0x187   :  { %v767_v33 = vpop.f32.mrf.mxu2 }
 0x188   :  { %v1331_v62 = vmax.f32 %v767_v33, 0.0  ;;  %v591_v63 = vpop.f32.mrf.mxu0 }
 0x189   :  { %v1336_v35 = vmax.f32 %v591_v63, 0.0  ;;  %v680_v1 = vpop.f32.mrf.mxu1 }
 0x18a   :  { %v1659_v2 = vadd.f32 %v1658_v53, %v1331_v62  ;;  %v1337_v3 = vmax.f32 %v680_v1, 0.0 }
 0x18b   :  { %v1634_v4 = vadd.f32 %v1633_v56, %v1336_v35 }
 0x18c   :  { %v1647_v6 = vadd.f32 %v1646_v37, %v1337_v3 }
 0x18f   :  { %v769_v7 = vpop.f32.mrf.mxu2 }
 0x190   :  { %v1338_v8 = vmax.f32 %v769_v7, 0.0  ;;  %v594_v10 = vpop.f32.mrf.mxu0 }
 0x191   :  { %v1343_v12 = vmax.f32 %v594_v10, 0.0  ;;  %v683_v14 = vpop.f32.mrf.mxu1 }
 0x192   :  { %v1660_v16 = vadd.f32 %v1659_v2, %v1338_v8  ;;  %v1344_v18 = vmax.f32 %v683_v14, 0.0 }
 0x193   :  { %v1635_v19 = vadd.f32 %v1634_v4, %v1343_v12  ;;  %909 = vmatmul.bf16.gmra.mxu0 %v4171_v39 }
 0x194   :  { %v1648_v38 = vadd.f32 %v1647_v6, %v1344_v18  ;;  %998 = vmatmul.bf16.gmra.mxu1 %v4171_v39  ;;  %1087 = vmatmul.bf16.gmra.mxu2 %v4171_v39 }
 0x197   :  { %v772_v21 = vpop.f32.mrf.mxu2 }
 0x198   :  { %v1345_v32 = vmax.f32 %v772_v21, 0.0  ;;  %v596_v23 = vpop.f32.mrf.mxu0 }
 0x199   :  { %v1350_v24 = vmax.f32 %v596_v23, 0.0  ;;  %v685_v25 = vpop.f32.mrf.mxu1 }
 0x19a   :  { %v1661_v36 = vadd.f32 %v1660_v16, %v1345_v32  ;;  %v1351_v26 = vmax.f32 %v685_v25, 0.0 }
 0x19b   :  { %v4446_v27 = vadd.f32 %v1635_v19, %v1350_v24 }
 0x19c   :  { %v4448_v34 = vadd.f32 %v1648_v38, %v1351_v26 }
 0x19f   :  { %v774_v29 = vpop.f32.mrf.mxu2 }
 0x1a0   :  { %v1352_v30 = vmax.f32 %v774_v29, 0.0  ;;  %v875_v31 = vpop.f32.mrf.mxu0 }
 0x1a1   :  { %v964_v41 = vpop.f32.mrf.mxu1  ;;  %v1137_v44 = vmax.f32 %v875_v31, 0.0 }
 0x1a2   :  { %v4450_v43 = vadd.f32 %v1661_v36, %v1352_v30  ;;  %v1138_v47 = vmax.f32 %v964_v41, 0.0 }
 0x1a3   :  { %914 = vmatmul.bf16.gmra.mxu0 %v4180_v40 }
 0x1a4   :  { %1003 = vmatmul.bf16.gmra.mxu1 %v4180_v40  ;;  %1092 = vmatmul.bf16.gmra.mxu2 %v4180_v40 }
 0x1a7   :  { %v1053_v39 = vpop.f32.mrf.mxu2 }
 0x1a8   :  { %v877_v42 = vpop.f32.mrf.mxu0  ;;  %v1139_v37 = vmax.f32 %v1053_v39, 0.0 }
 0x1a9   :  { %v1144_v45 = vmax.f32 %v877_v42, 0.0  ;;  %v966_v46 = vpop.f32.mrf.mxu1 }
 0x1aa   :  { %v1145_v48 = vmax.f32 %v966_v46, 0.0 }
 0x1ab   :  { %v1409_v53 = vadd.f32 %v1144_v45, %v1137_v44 }
 0x1ac   :  { %v1422_v54 = vadd.f32 %v1145_v48, %v1138_v47 }
 0x1af   :  { %v1055_v56 = vpop.f32.mrf.mxu2 }
 0x1b0   :  { %v1146_v33 = vmax.f32 %v1055_v56, 0.0  ;;  %v880_v62 = vpop.f32.mrf.mxu0 }
 0x1b1   :  { %v1151_v63 = vmax.f32 %v880_v62, 0.0  ;;  %v969_v35 = vpop.f32.mrf.mxu1 }
 0x1b2   :  { %v1435_v1 = vadd.f32 %v1146_v33, %v1139_v37  ;;  %v1152_v2 = vmax.f32 %v969_v35, 0.0 }
 0x1b3   :  { %v1410_v3 = vadd.f32 %v1409_v53, %v1151_v63  ;;  %919 = vmatmul.bf16.gmra.mxu0 %v4189_v55 }
 0x1b4   :  { %v1423_v40 = vadd.f32 %v1422_v54, %v1152_v2  ;;  %1008 = vmatmul.bf16.gmra.mxu1 %v4189_v55  ;;  %1097 = vmatmul.bf16.gmra.mxu2 %v4189_v55 }
 0x1b7   :  { %v1058_v4 = vpop.f32.mrf.mxu2 }
 0x1b8   :  { %v1153_v6 = vmax.f32 %v1058_v4, 0.0  ;;  %v882_v7 = vpop.f32.mrf.mxu0 }
 0x1b9   :  { %v1158_v8 = vmax.f32 %v882_v7, 0.0  ;;  %v971_v10 = vpop.f32.mrf.mxu1 }
 0x1ba   :  { %v1436_v12 = vadd.f32 %v1435_v1, %v1153_v6  ;;  %v1159_v14 = vmax.f32 %v971_v10, 0.0 }
 0x1bb   :  { %v1411_v16 = vadd.f32 %v1410_v3, %v1158_v8 }
 0x1bc   :  { %v1424_v18 = vadd.f32 %v1423_v40, %v1159_v14 }
 0x1bf   :  { %v1060_v19 = vpop.f32.mrf.mxu2 }
 0x1c0   :  { %v1160_v38 = vmax.f32 %v1060_v19, 0.0  ;;  %v885_v21 = vpop.f32.mrf.mxu0 }
 0x1c1   :  { %v1165_v32 = vmax.f32 %v885_v21, 0.0  ;;  %v974_v23 = vpop.f32.mrf.mxu1 }
 0x1c2   :  { %v1437_v24 = vadd.f32 %v1436_v12, %v1160_v38  ;;  %v1166_v25 = vmax.f32 %v974_v23, 0.0 }
 0x1c3   :  { %v1412_v36 = vadd.f32 %v1411_v16, %v1165_v32  ;;  %924 = vmatmul.bf16.gmra.mxu0 %v4198_v17 }
 0x1c4   :  { %v1425_v55 = vadd.f32 %v1424_v18, %v1166_v25  ;;  %1013 = vmatmul.bf16.gmra.mxu1 %v4198_v17  ;;  %1102 = vmatmul.bf16.gmra.mxu2 %v4198_v17 }
 0x1c7   :  { %v1063_v26 = vpop.f32.mrf.mxu2 }
 0x1c8   :  { %v1167_v29 = vmax.f32 %v1063_v26, 0.0  ;;  %v887_v30 = vpop.f32.mrf.mxu0 }
 0x1c9   :  { %v1172_v31 = vmax.f32 %v887_v30, 0.0  ;;  %v976_v41 = vpop.f32.mrf.mxu1 }
 0x1ca   :  { %v1438_v39 = vadd.f32 %v1437_v24, %v1167_v29  ;;  %v1173_v42 = vmax.f32 %v976_v41, 0.0 }
 0x1cb   :  { %v1413_v44 = vadd.f32 %v1412_v36, %v1172_v31 }
 0x1cc   :  { %v1426_v45 = vadd.f32 %v1425_v55, %v1173_v42 }
 0x1cf   :  { %v1065_v46 = vpop.f32.mrf.mxu2 }
 0x1d0   :  { %v1174_v47 = vmax.f32 %v1065_v46, 0.0  ;;  %v890_v48 = vpop.f32.mrf.mxu0 }
 0x1d1   :  { %v1179_v53 = vmax.f32 %v890_v48, 0.0  ;;  %v979_v54 = vpop.f32.mrf.mxu1 }
 0x1d2   :  { %v1439_v56 = vadd.f32 %v1438_v39, %v1174_v47  ;;  %v1180_v37 = vmax.f32 %v979_v54, 0.0 }
 0x1d3   :  { %v1414_v33 = vadd.f32 %v1413_v44, %v1179_v53  ;;  %929 = vmatmul.bf16.gmra.mxu0 %v4207_v51 }
 0x1d4   :  { %v1427_v17 = vadd.f32 %v1426_v45, %v1180_v37  ;;  %1018 = vmatmul.bf16.gmra.mxu1 %v4207_v51  ;;  %1107 = vmatmul.bf16.gmra.mxu2 %v4207_v51 }
 0x1d7   :  { %v1068_v62 = vpop.f32.mrf.mxu2 }
 0x1d8   :  { %v1181_v63 = vmax.f32 %v1068_v62, 0.0  ;;  %v892_v35 = vpop.f32.mrf.mxu0 }
 0x1d9   :  { %v1186_v1 = vmax.f32 %v892_v35, 0.0  ;;  %v981_v2 = vpop.f32.mrf.mxu1 }
 0x1da   :  { %v1440_v3 = vadd.f32 %v1439_v56, %v1181_v63  ;;  %v1187_v40 = vmax.f32 %v981_v2, 0.0 }
 0x1db   :  { %v4464_v4 = vadd.f32 %v1414_v33, %v1186_v1 }
 0x1dc   :  { %v4466_v6 = vadd.f32 %v1427_v17, %v1187_v40 }
 0x1df   :  { %v1070_v7 = vpop.f32.mrf.mxu2 }
 0x1e0   :  { %v1188_v8 = vmax.f32 %v1070_v7, 0.0  ;;  %v895_v10 = vpop.f32.mrf.mxu0 }
 0x1e1   :  { %v984_v12 = vpop.f32.mrf.mxu1  ;;  %v1193_v21 = vmax.f32 %v895_v10, 0.0 }
 0x1e2   :  { %v4468_v14 = vadd.f32 %v1440_v3, %v1188_v8  ;;  %v1194_v23 = vmax.f32 %v984_v12, 0.0 }
 0x1e3   :  { %934 = vmatmul.bf16.gmra.mxu0 %v4220_v13 }
 0x1e4   :  { %1023 = vmatmul.bf16.gmra.mxu1 %v4220_v13  ;;  %1112 = vmatmul.bf16.gmra.mxu2 %v4220_v13 }
 0x1e7   :  { %v1073_v51 = vpop.f32.mrf.mxu2 }
 0x1e8   :  { %v897_v16 = vpop.f32.mrf.mxu0  ;;  %v1195_v13 = vmax.f32 %v1073_v51, 0.0 }
 0x1e9   :  { %v986_v18 = vpop.f32.mrf.mxu1  ;;  %v1200_v19 = vmax.f32 %v897_v16, 0.0 }
 0x1ea   :  { %v1201_v38 = vmax.f32 %v986_v18, 0.0 }
 0x1eb   :  { %v1500_v25 = vadd.f32 %v1200_v19, %v1193_v21 }
 0x1ec   :  { %v1513_v26 = vadd.f32 %v1201_v38, %v1194_v23 }
 0x1ef   :  { %v1075_v32 = vpop.f32.mrf.mxu2 }
 0x1f0   :  { %v900_v24 = vpop.f32.mrf.mxu0  ;;  %v1202_v31 = vmax.f32 %v1075_v32, 0.0 }
 0x1f1   :  { %v1207_v36 = vmax.f32 %v900_v24, 0.0  ;;  %v989_v55 = vpop.f32.mrf.mxu1 }
 0x1f2   :  { %v1208_v29 = vmax.f32 %v989_v55, 0.0  ;;  %v1526_v42 = vadd.f32 %v1202_v31, %v1195_v13 }
 0x1f3   :  { %v1501_v30 = vadd.f32 %v1500_v25, %v1207_v36  ;;  %939 = vmatmul.bf16.gmra.mxu0 %v4289_v5  ;;  %v4479_v36 = vpop.f32.mrf.mxu3 }
 0x1f4   :  { %v1514_v41 = vadd.f32 %v1513_v26, %v1208_v29  ;;  %1028 = vmatmul.bf16.gmra.mxu1 %v4289_v5  ;;  %1117 = vmatmul.bf16.gmra.mxu2 %v4289_v5 }
 0x1f7   :  { %v1078_v39 = vpop.f32.mrf.mxu2 }
 0x1f8   :  { %v1209_v44 = vmax.f32 %v1078_v39, 0.0  ;;  %v902_v45 = vpop.f32.mrf.mxu0 }
 0x1f9   :  { %v991_v46 = vpop.f32.mrf.mxu1  ;;  %v1214_v48 = vmax.f32 %v902_v45, 0.0 }
 0x1fa   :  { %v1527_v47 = vadd.f32 %v1526_v42, %v1209_v44  ;;  %v1215_v53 = vmax.f32 %v991_v46, 0.0 }
 0x1fb   :  { %v1502_v37 = vadd.f32 %v1501_v30, %v1214_v48  ;;  %v4488_v45 = vpop.f32.mrf.mxu3 }
 0x1fc   :  { %v1515_v62 = vadd.f32 %v1514_v41, %v1215_v53 }
 0x1ff   :  { %v1080_v54 = vpop.f32.mrf.mxu2 }
 0x200   :  { %v905_v56 = vpop.f32.mrf.mxu0  ;;  %v1216_v5 = vmax.f32 %v1080_v54, 0.0 }
 0x201   :  { %v1221_v33 = vmax.f32 %v905_v56, 0.0  ;;  %v994_v17 = vpop.f32.mrf.mxu1 }
 0x202   :  { %v1222_v63 = vmax.f32 %v994_v17, 0.0  ;;  %v1528_v3 = vadd.f32 %v1527_v47, %v1216_v5 }
 0x203   :  { %v1503_v35 = vadd.f32 %v1502_v37, %v1221_v33  ;;  %944 = vmatmul.bf16.gmra.mxu0 %v4371_v28 }
 0x204   :  { %v1516_v1 = vadd.f32 %v1515_v62, %v1222_v63  ;;  %1033 = vmatmul.bf16.gmra.mxu1 %v4371_v28  ;;  %1122 = vmatmul.bf16.gmra.mxu2 %v4371_v28 }
 0x207   :  { %v1083_v2 = vpop.f32.mrf.mxu2 }
 0x208   :  { %v1223_v40 = vmax.f32 %v1083_v2, 0.0  ;;  %v907_v7 = vpop.f32.mrf.mxu0 }
 0x209   :  { %v1228_v8 = vmax.f32 %v907_v7, 0.0  ;;  %v996_v10 = vpop.f32.mrf.mxu1 }
 0x20a   :  { %v1529_v12 = vadd.f32 %v1528_v3, %v1223_v40  ;;  %v1229_v51 = vmax.f32 %v996_v10, 0.0 }
 0x20b   :  { %v1504_v16 = vadd.f32 %v1503_v35, %v1228_v8 }
 0x20c   :  { %v1517_v18 = vadd.f32 %v1516_v1, %v1229_v51 }
 0x20f   :  { %v1085_v19 = vpop.f32.mrf.mxu2 }
 0x210   :  { %v1230_v38 = vmax.f32 %v1085_v19, 0.0  ;;  %v910_v21 = vpop.f32.mrf.mxu0 }
 0x211   :  { %v1235_v32 = vmax.f32 %v910_v21, 0.0  ;;  %v999_v23 = vpop.f32.mrf.mxu1 }
 0x212   :  { %v1530_v24 = vadd.f32 %v1529_v12, %v1230_v38  ;;  %v1236_v25 = vmax.f32 %v999_v23, 0.0 }
 0x213   :  { %v1505_v28 = vadd.f32 %v1504_v16, %v1235_v32  ;;  %949 = vmatmul.bf16.gmra.mxu0 %v4398_v15 }
 0x214   :  { %v1518_v55 = vadd.f32 %v1517_v18, %v1236_v25  ;;  %1038 = vmatmul.bf16.gmra.mxu1 %v4398_v15  ;;  %1127 = vmatmul.bf16.gmra.mxu2 %v4398_v15  ;;  %v848_v15 = vpop.f32.mrf.mxu3 }
 0x217   :  { %v1088_v26 = vpop.f32.mrf.mxu2 }
 0x218   :  { %v1237_v29 = vmax.f32 %v1088_v26, 0.0  ;;  %v912_v30 = vpop.f32.mrf.mxu0 }
 0x219   :  { %v1242_v31 = vmax.f32 %v912_v30, 0.0  ;;  %v1001_v41 = vpop.f32.mrf.mxu1 }
 0x21a   :  { %v1531_v13 = vadd.f32 %v1530_v24, %v1237_v29  ;;  %v1243_v39 = vmax.f32 %v1001_v41, 0.0 }
 0x21b   :  { %v4484_v42 = vadd.f32 %v1505_v28, %v1242_v31 }
 0x21c   :  { %v4486_v44 = vadd.f32 %v1518_v55, %v1243_v39  ;;  %v851_v8 = vpop.f32.mrf.mxu3 }
 0x21e   :  { %5296 = vst [vmem:[#allocation2_spill] sm:$0xff] %v4486_v44 }
 0x21f   :  { %v1090_v46 = vpop.f32.mrf.mxu2 }
 0x220   :  { %v1244_v47 = vmax.f32 %v1090_v46, 0.0  ;;  %v915_v48 = vpop.f32.mrf.mxu0 }
 0x221   :  { %v1004_v53 = vpop.f32.mrf.mxu1  ;;  %v1249_v33 = vmax.f32 %v915_v48, 0.0 }
 0x222   :  { %v4490_v54 = vadd.f32 %v1531_v13, %v1244_v47  ;;  %v1250_v63 = vmax.f32 %v1004_v53, 0.0 }
 0x224   :  { %5297 = vst [vmem:[#allocation3_spill] sm:$0xff] %v4490_v54  ;;  %v853_v55 = vpop.f32.mrf.mxu3 }
 0x227   :  { %v1093_v56 = vpop.f32.mrf.mxu2 }
 0x228   :  { %v917_v37 = vpop.f32.mrf.mxu0  ;;  %v1251_v3 = vmax.f32 %v1093_v56, 0.0 }
 0x229   :  { %v1256_v17 = vmax.f32 %v917_v37, 0.0  ;;  %v1006_v62 = vpop.f32.mrf.mxu1 }
 0x22a   :  { %v1257_v35 = vmax.f32 %v1006_v62, 0.0 }
 0x22b   :  { %v1591_v5 = vadd.f32 %v1256_v17, %v1249_v33 }
 0x22c   :  { %v1604_v1 = vadd.f32 %v1257_v35, %v1250_v63  ;;  %v856_v56 = vpop.f32.mrf.mxu3 }
 0x22f   :  { %v1095_v2 = vpop.f32.mrf.mxu2 }
 0x230   :  { %v1258_v40 = vmax.f32 %v1095_v2, 0.0  ;;  %v920_v7 = vpop.f32.mrf.mxu0 }
 0x231   :  { %v1263_v10 = vmax.f32 %v920_v7, 0.0  ;;  %v1009_v12 = vpop.f32.mrf.mxu1 }
 0x232   :  { %v1617_v51 = vadd.f32 %v1258_v40, %v1251_v3  ;;  %v1264_v16 = vmax.f32 %v1009_v12, 0.0  ;;  %v1304_v3 = vmax.f32 %v4488_v45, 0.0  ;;  %v1311_v40 = vmax.f32 %v848_v15, 0.0 }
 0x233   :  { %v1592_v18 = vadd.f32 %v1591_v5, %v1263_v10 }
 0x234   :  { %v1605_v19 = vadd.f32 %v1604_v1, %v1264_v16  ;;  %v858_v7 = vpop.f32.mrf.mxu3  ;;  %v3867_v16 = vmov 64.0  }
 0x235   :  { %3855 = vrcp.f32 %v3867_v16 }
 0x237   :  { %v1098_v38 = vpop.f32.mrf.mxu2 }
 0x238   :  { %v1265_v21 = vmax.f32 %v1098_v38, 0.0  ;;  %v922_v32 = vpop.f32.mrf.mxu0  ;;  %v1669_v38 = vadd.f32 %v1311_v40, %v1304_v3 }
 0x239   :  { %v1270_v23 = vmax.f32 %v922_v32, 0.0  ;;  %v1011_v24 = vpop.f32.mrf.mxu1 }
 0x23a   :  { %v1618_v25 = vadd.f32 %v1617_v51, %v1265_v21  ;;  %v1271_v28 = vmax.f32 %v1011_v24, 0.0  ;;  %v1318_v21 = vmax.f32 %v851_v8, 0.0 }
 0x23b   :  { %v1593_v26 = vadd.f32 %v1592_v18, %v1270_v23 }
 0x23c   :  { %v1606_v29 = vadd.f32 %v1605_v19, %v1271_v28  ;;  %v1670_v28 = vadd.f32 %v1669_v38, %v1318_v21 }
 0x23f   :  { %v1100_v30 = vpop.f32.mrf.mxu2 }
 0x240   :  { %v1272_v31 = vmax.f32 %v1100_v30, 0.0  ;;  %v925_v41 = vpop.f32.mrf.mxu0 }
 0x241   :  { %v1277_v13 = vmax.f32 %v925_v41, 0.0  ;;  %v1014_v39 = vpop.f32.mrf.mxu1 }
 0x242   :  { %v1619_v46 = vadd.f32 %v1618_v25, %v1272_v31  ;;  %v1278_v47 = vmax.f32 %v1014_v39, 0.0  ;;  %v861_v31 = vpop.f32.mrf.mxu3 }
 0x243   :  { %v1594_v48 = vadd.f32 %v1593_v26, %v1277_v13  ;;  %v1325_v26 = vmax.f32 %v853_v55, 0.0 }
 0x244   :  { %v1607_v53 = vadd.f32 %v1606_v29, %v1278_v47  ;;  %v3856_v29 = vpop.eup %3855 }
 0x245   :  { %v1671_v39 = vadd.f32 %v1670_v28, %v1325_v26  ;;  %vm1726_vm0 = vweird.f32 %v3856_v29  ;;  %v1481_v28 = vrot.slane %v4412_v59, 4 }
 0x247   :  { %v1103_v37 = vpop.f32.mrf.mxu2 }
 0x248   :  { %v1279_v33 = vmax.f32 %v1103_v37, 0.0  ;;  %v927_v17 = vpop.f32.mrf.mxu0 }
 0x249   :  { %v1284_v62 = vmax.f32 %v927_v17, 0.0  ;;  %v1016_v63 = vpop.f32.mrf.mxu1  ;;  %v1339_v17 = vmax.f32 %v858_v7, 0.0 }
 0x24a   :  { %v1620_v35 = vadd.f32 %v1619_v46, %v1279_v33  ;;  %v1285_v5 = vmax.f32 %v1016_v63, 0.0  ;;  %v1332_v46 = vmax.f32 %v856_v56, 0.0  ;;  %v863_v40 = vpop.f32.mrf.mxu3 }
 0x24b   :  { %v1595_v1 = vadd.f32 %v1594_v48, %v1284_v62  ;;  %v1353_v16 = vmax.f32 %v863_v40, 0.0 }
 0x24c   :  { %v1608_v2 = vadd.f32 %v1607_v53, %v1285_v5  ;;  %v1722_v53 = vmul.f32 64.0, %v3856_v29  ;;  %v1672_v33 = vadd.f32 %v1671_v39, %v1332_v46 }
 0x24e   :  { %v1723_v62 = vsub.f32 1.0, %v1722_v53  ;;  %v1403_v53 = vrot.slane %v4227_v22, 4 }
 0x24f   :  { %v1105_v10 = vpop.f32.mrf.mxu2 }
 0x250   :  { %v1286_v12 = vmax.f32 %v1105_v10, 0.0  ;;  %v930_v51 = vpop.f32.mrf.mxu0  ;;  %v1724_v56 = vmul.f32 %v3856_v29, %v1723_v62  ;;  %v1364_v10 = vrot.slane %v4213_v9, 4 }
 0x251   :  { %v1291_v18 = vmax.f32 %v930_v51, 0.0  ;;  %v1019_v19 = vpop.f32.mrf.mxu1 }
 0x252   :  { %v1621_v32 = vadd.f32 %v1620_v35, %v1286_v12  ;;  %v1292_v23 = vmax.f32 %v1019_v19, 0.0  ;;  %v1297_v12 = vmax.f32 %v4479_v36, 0.0  ;;  %v1725_v7 = vadd.f32 %v3856_v29, %v1724_v56 }
 0x253   :  { %v1596_v24 = vadd.f32 %v1595_v1, %v1291_v18  ;;  %v1673_v1 = vadd.f32 %v1672_v33, %v1339_v17  ;;  %v1377_v18 = vrot.slane %v4215_v11, 4  ;;  %v1455_v19 = vrot.slane %v4404_v49, 4 }
 0x254   :  { %v1609_v25 = vadd.f32 %v1608_v2, %v1292_v23  ;;  %v1346_v2 = vmax.f32 %v861_v31, 0.0  ;;  %v1365_v21 = vadd.f32 %v1364_v10, %v4213_v9  ;;  %v1637_v23 = vrot.slane %v4446_v27, 4 }
 0x255   :  { %v1468_v36 = vrot.slane %v4408_v52, 4  ;;  %v1584_v9 = vadd.f32 %v4428_v60, %v1297_v12  ;;  %v1378_v31 = vadd.f32 %v1377_v18, %v4215_v11  ;;  %v1663_v33 = vrot.slane %v4450_v43, 4 }
 0x256   :  { %v1674_v51 = vadd.f32 %v1673_v1, %v1346_v2  ;;  %v1366_v39 = vrot.slane %v1365_v21, 2 }
 0x257   :  { %v1108_v30 = vpop.f32.mrf.mxu2  ;;  %v1469_v60 = vadd.f32 %v1468_v36, %v4408_v52  ;;  %v1664_v10 = vadd.f32 %v1663_v33, %v4450_v43 }
 0x258   :  { %v1293_v45 = vmax.f32 %v1108_v30, 0.0  ;;  %v932_v15 = vpop.f32.mrf.mxu0  ;;  %v1546_v30 = vrot.slane %v4426_v58, 4  ;;  %v1367_v1 = vadd.f32 %v1366_v39, %v1365_v21 }
 0x259   :  { %v1298_v41 = vmax.f32 %v932_v15, 0.0  ;;  %v1021_v13 = vpop.f32.mrf.mxu1  ;;  %v1675_v15 = vadd.f32 %v1674_v51, %v1353_v16  ;;  %v1470_v40 = vrot.slane %v1469_v60, 2 }
 0x25a   :  { %v1622_v47 = vadd.f32 %v1621_v32, %v1293_v45  ;;  %v1299_v48 = vmax.f32 %v1021_v13, 0.0  ;;  %v1241_v32 = vmax.f32 %v4410_v57, 0.0  ;;  %v1559_v45 = vrot.slane %v4430_v61, 4 }
 0x25b   :  { %v4493_v37 = vadd.f32 %v1596_v24, %v1298_v41  ;;  %v1650_v24 = vrot.slane %v4448_v34, 4  ;;  %v4523_v57 = vsel %vm1726_vm0, %v3856_v29, %v1725_v7  ;;  %v1390_v41 = vrot.slane %v4222_v20, 4 }
 0x25c   :  { %v4495_v8 = vadd.f32 %v1609_v25, %v1299_v48  ;;  %v1456_v13 = vadd.f32 %v1455_v19, %v4404_v49  ;;  %v1493_v46 = vadd.f32 %v4406_v50, %v1241_v32  ;;  %v1482_v29 = vadd.f32 %v1481_v28, %v4412_v59 }
 0x25d   :  { %v1651_v48 = vadd.f32 %v1650_v24, %v4448_v34  ;;  %v1547_v11 = vadd.f32 %v1546_v30, %v4426_v58  ;;  %v1560_v17 = vadd.f32 %v1559_v45, %v4430_v61  ;;  %v1585_v49 = vrot.slane %v1584_v9, 4 }
 0x25e   :  { %v1676_v62 = vrot.slane %v1675_v15, 4  ;;  %v1391_v50 = vadd.f32 %v1390_v41, %v4222_v20  ;;  %v1572_v34 = vrot.slane %v4432_v0, 4  ;;  %v1494_v52 = vrot.slane %v1493_v46, 4 }
 0x25f   :  { %v1110_v55 = vpop.f32.mrf.mxu2  ;;  %v1652_v59 = vrot.slane %v1651_v48, 2  ;;  %v1404_v58 = vadd.f32 %v1403_v53, %v4227_v22  ;;  %v1483_v61 = vrot.slane %v1482_v29, 2  ;;  %v1548_v20 = vrot.slane %v1547_v11, 2 }
 0x260   :  { %v1300_v63 = vmax.f32 %v1110_v55, 0.0  ;;  %v4497_v35 = vpop.f32.mrf.mxu0  ;;  %v1379_v55 = vrot.slane %v1378_v31, 2  ;;  %v1561_v51 = vrot.slane %v1560_v17, 2  ;;  %v1586_v16 = vadd.f32 %v1585_v49, %v1584_v9 }
 0x261   :  { %v4499_v5 = vpop.f32.mrf.mxu1  ;;  %v1677_v7 = vadd.f32 %v1676_v62, %v1675_v15  ;;  %v1392_v19 = vrot.slane %v1391_v50, 2  ;;  %v1573_v32 = vadd.f32 %v1572_v34, %v4432_v0  ;;  %v1495_v24 = vadd.f32 %v1494_v52, %v1493_v46 }
 0x262   :  { %v4501_v3 = vadd.f32 %v1622_v47, %v1300_v63  ;;  %v1638_v47 = vadd.f32 %v1637_v23, %v4446_v27  ;;  %v1457_v27 = vrot.slane %v1456_v13, 2  ;;  %v1380_v18 = vadd.f32 %v1379_v55, %v1378_v31 }
 0x263   :  { %v1368_v23 = vrot.slane %v1367_v1, 1  ;;  %v1653_v28 = vadd.f32 %v1652_v59, %v1651_v48  ;;  %v1405_v22 = vrot.slane %v1404_v58, 2  ;;  %v1471_v30 = vadd.f32 %v1470_v40, %v1469_v60 }
 0x264   :  { %5298 = vst [vmem:[#allocation4_spill] sm:$0xff] %v4501_v3  ;;  %v1639_v2 = vrot.slane %v1638_v47, 2  ;;  %v1458_v21 = vadd.f32 %v1457_v27, %v1456_v13  ;;  %v1484_v45 = vadd.f32 %v1483_v61, %v1482_v29  ;;  %v1665_v41 = vrot.slane %v1664_v10, 2 }
 0x265   :  { %v1549_v43 = vadd.f32 %v1548_v20, %v1547_v11  ;;  %v1562_v39 = vadd.f32 %v1561_v51, %v1560_v17  ;;  %v1587_v53 = vrot.slane %v1586_v16, 2  ;;  %v1678_v33 = vrot.slane %v1677_v7, 2 }
 0x266   :  { %v1640_v36 = vadd.f32 %v1639_v2, %v1638_v47  ;;  %v1381_v54 = vrot.slane %v1380_v18, 1  ;;  %v1393_v9 = vadd.f32 %v1392_v19, %v1391_v50  ;;  %v1459_v15 = vrot.slane %v1458_v21, 1 }
 0x267   :  { %v4507_v38 = vpop.f32.mrf.mxu2  ;;  %v1574_v31 = vrot.slane %v1573_v32, 2  ;;  %v1369_v13 = vadd.f32 %v1368_v23, %v1367_v1  ;;  %v1496_v0 = vrot.slane %v1495_v24, 2  ;;  %v1654_v46 = vrot.slane %v1653_v28, 1 }
 0x268   :  { %v4513_v25 = vpop.f32.mrf.mxu0  ;;  %v1641_v62 = vrot.slane %v1640_v36, 1  ;;  %v1406_v48 = vadd.f32 %v1405_v22, %v1404_v58  ;;  %v1472_v60 = vrot.slane %v1471_v30, 1  ;;  %v1485_v29 = vrot.slane %v1484_v45, 1 }
 0x269   :  { %v4517_v26 = vpop.f32.mrf.mxu1  ;;  %v1666_v55 = vadd.f32 %v1665_v41, %v1664_v10  ;;  %v1550_v17 = vrot.slane %v1549_v43, 1  ;;  %v1563_v27 = vrot.slane %v1562_v39, 1  ;;  %v1588_v34 = vadd.f32 %v1587_v53, %v1586_v16 }
 0x26a   :  { %v1679_v50 = vadd.f32 %v1678_v33, %v1677_v7  ;;  %v1382_v52 = vadd.f32 %v1381_v54, %v1380_v18  ;;  %v1394_v2 = vrot.slane %v1393_v9, 1  ;;  %v1460_v59 = vadd.f32 %v1459_v15, %v1458_v21 }
 0x26b   :  { %v1575_v40 = vadd.f32 %v1574_v31, %v1573_v32  ;;  %v4555_v1 = vmul.f32 %v4523_v57, %v1369_v13  ;;  %v1497_v61 = vadd.f32 %v1496_v0, %v1495_v24  ;;  %v1642_v20 = vadd.f32 %v1641_v62, %v1640_v36 }
 0x26c   :  { %v1655_v51 = vadd.f32 %v1654_v46, %v1653_v28  ;;  %v1407_v58 = vrot.slane %v1406_v48, 1  ;;  %v1473_v19 = vadd.f32 %v1472_v60, %v1471_v30  ;;  %v1486_v23 = vadd.f32 %v1485_v29, %v1484_v45 }
 0x26d   :  { %v1667_v10 = vrot.slane %v1666_v55, 1  ;;  %v1551_v22 = vadd.f32 %v1550_v17, %v1549_v43  ;;  %v1564_v41 = vadd.f32 %v1563_v27, %v1562_v39  ;;  %v1589_v44 = vrot.slane %v1588_v34, 1 }
 0x26e   :  { %v1680_v3 = vrot.slane %v1679_v50, 1  ;;  %v4558_v16 = vmul.f32 %v4523_v57, %v1382_v52  ;;  %v1395_v54 = vadd.f32 %v1394_v2, %v1393_v9  ;;  %v4561_v7 = vmul.f32 %v4523_v57, %v1460_v59 }
 0x26f   :  { %v4539_v63 = vpop.f32.mrf.mxu2  ;;  %v1576_v18 = vrot.slane %v1575_v40, 1  ;;  %v1756_v32 = vmul.f32 %v4555_v1, %v4555_v1  ;;  %v1498_v24 = vrot.slane %v1497_v61, 1  ;;  %v4568_v36 = vmul.f32 %v4523_v57, %v1642_v20 }
 0x270   :  { %v4541_v56 = vpop.f32.mrf.mxu0  ;;  %v4571_v28 = vmul.f32 %v4523_v57, %v1655_v51  ;;  %v1408_v45 = vadd.f32 %v1407_v58, %v1406_v48  ;;  %v4576_v43 = vmul.f32 %v4523_v57, %v1473_v19  ;;  %v4579_v39 = vmul.f32 %v4523_v57, %v1486_v23 }
 0x271   :  { %v4545_v12 = vpop.f32.mrf.mxu1  ;;  %v1668_v53 = vadd.f32 %v1667_v10, %v1666_v55  ;;  %v4584_v9 = vmul.f32 %v4523_v57, %v1551_v22  ;;  %v4587_v15 = vmul.f32 %v4523_v57, %v1564_v41  ;;  %v1590_v31 = vadd.f32 %v1589_v44, %v1588_v34 }
 0x272   :  { %5299 = vst [vmem:[#allocation5_spill] sm:$0xff] %v4579_v39  ;;  %v1681_v13 = vadd.f32 %v1680_v3, %v1679_v50  ;;  %v1757_v0 = vmul.f32 %v4558_v16, %v4558_v16  ;;  %v4592_v62 = vmul.f32 %v4523_v57, %v1395_v54  ;;  %v1763_v46 = vmul.f32 %v4561_v7, %v4561_v7 }
 0x273   :  { %v1577_v48 = vadd.f32 %v1576_v18, %v1575_v40  ;;  %v1499_v60 = vadd.f32 %v1498_v24, %v1497_v61  ;;  %v1851_v29 = vmul.f32 %v4568_v36, %v4568_v36  ;;  %v1852_v55 = vmul.f32 %v4571_v28, %v4571_v28 }
 0x274   :  { %5300 = vst [vmem:[#allocation6_spill] sm:$0xff] %v4592_v62  ;;  %v4601_v44 = vmul.f32 %v4523_v57, %v1408_v45  ;;  %v1764_v3 = vmul.f32 %v4576_v43, %v4576_v43  ;;  %v1765_v17 = vmul.f32 %v4579_v39, %v4579_v39  ;;  %v4608_v27 = vmul.f32 %v4523_v57, %v1668_v53 }
 0x275   :  { %v1844_v34 = vmul.f32 %v4584_v9, %v4584_v9  ;;  %v1845_v50 = vmul.f32 %v4587_v15, %v4587_v15  ;;  %v4615_v52 = vmul.f32 %v4523_v57, %v1590_v31  ;;  %v4618_v2 = vmul.f32 %v4523_v57, %v1681_v13 }
 0x276   :  { %5301 = vst [vmem:[#allocation7_spill] sm:$0xff] %v4601_v44  ;;  %v1758_v59 = vmul.f32 %v4592_v62, %v4592_v62  ;;  %v4623_v40 = vmul.f32 %v4523_v57, %v1577_v48  ;;  %v1785_v20 = vsel %vm1784_vm1, %v1763_v46, %v1756_v32  ;;  %v4629_v51 = vmul.f32 %v4523_v57, %v1499_v60 }
 0x277   :  { %v4548_v49 = vpop.f32.mrf.mxu2  ;;  %v1872_v19 = vsel %vm1784_vm1, %v1851_v29, %v1844_v34  ;;  %v1873_v23 = vsel %vm1784_vm1, %v1852_v55, %v1845_v50  ;;  %v1853_v10 = vmul.f32 %v4608_v27, %v4608_v27  ;;  %v1786_v41 = vsel %vm1784_vm1, %v1764_v3, %v1757_v0 }
 0x278   :  { %v4550_v47 = vpop.f32.mrf.mxu0  ;;  %5302 = vst [vmem:[#allocation8_spill] sm:$0xff] %v4629_v51  ;;  %v1787_v54 = vsel %vm1784_vm1, %v1765_v17, %v1758_v59  ;;  %v4643_v18 = vmul.f32 %v4601_v44, %v4601_v44  ;;  %v1847_v32 = vmul.f32 %v4615_v52, %v4615_v52  ;;  %v1854_v24 = vmul.f32 %v4618_v2, %v4618_v2 }
 0x279   :  { %v4552_v11 = vpop.f32.mrf.mxu1  ;;  %v4650_v45 = vsel %vm1799_vm2, %v1785_v20, 0.0  ;;  %v1846_v53 = vmul.f32 %v4623_v40, %v4623_v40  ;;  %v1312_v31 = vmax.f32 %v4513_v25, 0.0  ;;  %v1886_v13 = vsel %vm1799_vm2, %v1872_v19, 0.0 }
 0x27a   :  { %v1887_v0 = vsel %vm1799_vm2, %v1873_v23, 0.0  ;;  %v4659_v46 = vmul.f32 %v4629_v51, %v4629_v51  ;;  %v1313_v48 = vmax.f32 %v4517_v26, 0.0  ;;  %v4663_v60 = vsel %vm1799_vm2, %v1786_v41, 0.0 }
 0x27b   :  { %v4666_v29 = vsel %vm1799_vm2, %v1787_v54, 0.0  ;;  %v1416_v55 = vrot.slane %v4464_v4, 4  ;;  %v1305_v25 = vmax.f32 %v4497_v35, 0.0  ;;  %v1319_v3 = vmax.f32 %v4541_v56, 0.0 }
 0x27c   :  { %v1874_v17 = vsel %vm1784_vm1, %v1853_v10, %v1846_v53  ;;  %v1306_v34 = vmax.f32 %v4499_v5, 0.0  ;;  %v1320_v50 = vmax.f32 %v4545_v12, 0.0  ;;  %v4675_v26 = vsel %vm1784_vm1, %v1854_v24, %v1847_v32 }
 0x27d   :  { %v4677_v59 = vadd.f32 %v1887_v0, %v1886_v13  ;;  %v1507_v20 = vrot.slane %v4484_v42, 4  ;;  %v1598_v19 = vrot.slane %v4493_v37, 4  ;;  %v1682_v23 = vadd.f32 %v1312_v31, %v1305_v25 }
 0x27e   :  { %v1326_v35 = vmax.f32 %v4550_v47, 0.0  ;;  %v1429_v56 = vrot.slane %v4466_v6, 4  ;;  %v1695_v10 = vadd.f32 %v1313_v48, %v1306_v34  ;;  %v1327_v5 = vmax.f32 %v4552_v11, 0.0 }
 0x27f   :  { %v4563_v21 = vpop.f32.mrf.mxu2  ;;  %v4687_v54 = vsel %vm1799_vm2, %v1874_v17, 0.0  ;;  %v1417_v32 = vadd.f32 %v1416_v55, %v4464_v4  ;;  %v1611_v24 = vrot.slane %v4495_v8, 4  ;;  %v1683_v53 = vadd.f32 %v1682_v23, %v1319_v3 }
 0x280   :  { %v4573_v30 = vpop.f32.mrf.mxu0  ;;  %v1442_v47 = vrot.slane %v4468_v14, 4  ;;  %v1314_v0 = vmax.f32 %v4539_v63, 0.0  ;;  %v1696_v25 = vadd.f32 %v1695_v10, %v1320_v50  ;;  %v1508_v11 = vadd.f32 %v1507_v20, %v4484_v42  ;;  %v5303_v63 = vld [vmem:[#allocation4_spill] sm:$0xff] }
 0x281   :  { %v4581_v33 = vpop.f32.mrf.mxu1  ;;  %v1333_v31 = vmax.f32 %v4573_v30, 0.0  ;;  %v1599_v17 = vadd.f32 %v1598_v19, %v4493_v37  ;;  %v1684_v34 = vadd.f32 %v1683_v53, %v1326_v35  ;;  %v1307_v55 = vmax.f32 %v4507_v38, 0.0 }
 0x282   :  { %v1334_v48 = vmax.f32 %v4581_v33, 0.0  ;;  %v1321_v3 = vmax.f32 %v4548_v49, 0.0  ;;  %v1697_v30 = vadd.f32 %v1696_v25, %v1327_v5  ;;  %v1612_v51 = vadd.f32 %v1611_v24, %v4495_v8  ;;  %v5305_v5 = vld [vmem:[#allocation3_spill] sm:$0xff] }
 0x283   :  { %v1624_v50 = vrot.slane %v5303_v63, 4  ;;  %v1685_v10 = vadd.f32 %v1684_v34, %v1333_v31  ;;  %v1708_v44 = vadd.f32 %v1314_v0, %v1307_v55  ;;  %v1328_v42 = vmax.f32 %v4563_v21, 0.0 }
 0x284   :  { %v1698_v37 = vadd.f32 %v1697_v30, %v1334_v48  ;;  %v1509_v19 = vrot.slane %v1508_v11, 2  ;;  %v1600_v38 = vrot.slane %v1599_v17, 2  ;;  %v1533_v25 = vrot.slane %v5305_v5, 4 }
 0x285   :  { %v1613_v31 = vrot.slane %v1612_v51, 2 }
 0x286   :  { %v1601_v62 = vadd.f32 %v1600_v38, %v1599_v17 }
 0x287   :  { %v4625_v61 = vpop.f32.mrf.mxu2 }
 0x288   :  { %v4631_v58 = vpop.f32.mrf.mxu0  ;;  %v1335_v8 = vmax.f32 %v4625_v61, 0.0  ;;  %v1534_v61 = vadd.f32 %v1533_v25, %v5305_v5 }
 0x289   :  { %v4637_v22 = vpop.f32.mrf.mxu1  ;;  %v1340_v4 = vmax.f32 %v4631_v58, 0.0  ;;  %v5304_v58 = vld [vmem:[#allocation2_spill] sm:$0xff] }
 0x28a   :  { %v1341_v23 = vmax.f32 %v4637_v22, 0.0  ;;  %v1520_v35 = vrot.slane %v5304_v58, 4  ;;  %v1709_v22 = vadd.f32 %v1708_v44, %v1321_v3  ;;  %v1535_v38 = vrot.slane %v1534_v61, 2 }
 0x28b   :  { %v1686_v53 = vadd.f32 %v1685_v10, %v1340_v4  ;;  %v1418_v4 = vrot.slane %v1417_v32, 2 }
 0x28c   :  { %v1699_v24 = vadd.f32 %v1698_v37, %v1341_v23  ;;  %v1521_v10 = vadd.f32 %v1520_v35, %v5304_v58  ;;  %v1602_v58 = vrot.slane %v1601_v62, 1 }
 0x28f   :  { %v4682_v41 = vpop.f32.mrf.mxu2 }
 0x290   :  { %v950_v12 = vpop.f32.mrf.mxu0  ;;  %v1342_v34 = vmax.f32 %v4682_v41, 0.0 }
 0x291   :  { %v1039_v13 = vpop.f32.mrf.mxu1  ;;  %v1347_v33 = vmax.f32 %v950_v12, 0.0  ;;  %v1625_v12 = vadd.f32 %v1624_v50, %v5303_v63  ;;  %v1430_v63 = vadd.f32 %v1429_v56, %v4466_v6  ;;  %v1510_v50 = vadd.f32 %v1509_v19, %v1508_v11 }
 0x292   :  { %v1348_v20 = vmax.f32 %v1039_v13, 0.0  ;;  %v1710_v13 = vadd.f32 %v1709_v22, %v1328_v42  ;;  %v1614_v42 = vadd.f32 %v1613_v31, %v1612_v51  ;;  %v1419_v22 = vadd.f32 %v1418_v4, %v1417_v32 }
 0x293   :  { %v1687_v0 = vadd.f32 %v1686_v53, %v1347_v33  ;;  %v1626_v41 = vrot.slane %v1625_v12, 2  ;;  %v1511_v6 = vrot.slane %v1510_v50, 1 }
 0x294   :  { %v1700_v55 = vadd.f32 %v1699_v24, %v1348_v20  ;;  %v1711_v3 = vadd.f32 %v1710_v13, %v1335_v8  ;;  %v1522_v24 = vrot.slane %v1521_v10, 2  ;;  %v1431_v8 = vrot.slane %v1430_v63, 2 }
 0x295   :  { %v1420_v19 = vrot.slane %v1419_v22, 1 }
 0x296   :  { %v1712_v20 = vadd.f32 %v1711_v3, %v1342_v34  ;;  %v1523_v31 = vadd.f32 %v1522_v24, %v1521_v10 }
 0x297   :  { %v1128_v49 = vpop.f32.mrf.mxu2 }
 0x298   :  { %v952_v39 = vpop.f32.mrf.mxu0  ;;  %v1349_v23 = vmax.f32 %v1128_v49, 0.0 }
 0x299   :  { %v1354_v21 = vmax.f32 %v952_v39, 0.0  ;;  %v1041_v48 = vpop.f32.mrf.mxu1  ;;  %v1443_v39 = vadd.f32 %v1442_v47, %v4468_v14  ;;  %v1615_v14 = vrot.slane %v1614_v42, 1  ;;  %v1627_v47 = vadd.f32 %v1626_v41, %v1625_v12 }
 0x29a   :  { %v1355_v30 = vmax.f32 %v1041_v48, 0.0  ;;  %v1713_v5 = vadd.f32 %v1712_v20, %v1349_v23  ;;  %v1536_v48 = vadd.f32 %v1535_v38, %v1534_v61  ;;  %v1421_v41 = vadd.f32 %v1420_v19, %v1419_v22 }
 0x29b   :  { %v1688_v44 = vadd.f32 %v1687_v0, %v1354_v21  ;;  %v1444_v0 = vrot.slane %v1443_v39, 2  ;;  %v1603_v21 = vadd.f32 %v1602_v58, %v1601_v62  ;;  %v1616_v23 = vadd.f32 %v1615_v14, %v1614_v42 }
 0x29c   :  { %v1701_v37 = vadd.f32 %v1700_v55, %v1355_v30  ;;  %v1890_v55 = vadd.f32 %v4687_v54, %v4677_v59  ;;  %v1432_v30 = vadd.f32 %v1431_v8, %v1430_v63  ;;  %v1524_v20 = vrot.slane %v1523_v31, 1 }
 0x29d   :  { %v1689_v33 = vrot.slane %v1688_v44, 4  ;;  %v1445_v4 = vadd.f32 %v1444_v0, %v1443_v39  ;;  %v4716_v10 = vmul.f32 %v4523_v57, %v1603_v21  ;;  %v1537_v61 = vrot.slane %v1536_v48, 1 }
 0x29e   :  { %v1702_v53 = vrot.slane %v1701_v37, 4  ;;  %v1891_v59 = vsel %vm1799_vm2, %v4675_v26, 0.0  ;;  %v1433_v54 = vrot.slane %v1432_v30, 1  ;;  %v4727_v58 = vmul.f32 %v4523_v57, %v1616_v23 }
 0x29f   :  { %v1690_v17 = vadd.f32 %v1689_v33, %v1688_v44  ;;  %v1130_v35 = vpop.f32.mrf.mxu2  ;;  %v1512_v44 = vadd.f32 %v1511_v6, %v1510_v50  ;;  %v1446_v63 = vrot.slane %v1445_v4, 1  ;;  %v1525_v26 = vadd.f32 %v1524_v20, %v1523_v31 }
 0x2a0   :  { %v1703_v25 = vadd.f32 %v1702_v53, %v1701_v37  ;;  %v1356_v49 = vmax.f32 %v1130_v35, 0.0  ;;  %v1628_v37 = vrot.slane %v1627_v47, 1  ;;  %v4733_v35 = vmul.f32 %v4523_v57, %v1421_v41 }
 0x2a1   :  { %v1691_v56 = vrot.slane %v1690_v17, 2  ;;  %v4721_v39 = vmul.f32 %v4523_v57, %v1512_v44  ;;  %v1848_v38 = vmul.f32 %v4716_v10, %v4716_v10  ;;  %v1892_v0 = vadd.f32 %v1891_v59, %v1890_v55 }
 0x2a2   :  { %v1704_v11 = vrot.slane %v1703_v25, 2  ;;  %v1714_v51 = vadd.f32 %v1713_v5, %v1356_v49  ;;  %v1629_v42 = vadd.f32 %v1628_v37, %v1627_v47  ;;  %v1434_v6 = vadd.f32 %v1433_v54, %v1432_v30 }
 0x2a3   :  { %v1692_v32 = vadd.f32 %v1691_v56, %v1690_v17  ;;  %v1447_v56 = vadd.f32 %v1446_v63, %v1445_v4  ;;  %v1767_v47 = vmul.f32 %v4721_v39, %v4721_v39  ;;  %v1849_v19 = vmul.f32 %v4727_v58, %v4727_v58 }
 0x2a4   :  { %v1705_v13 = vadd.f32 %v1704_v11, %v1703_v25  ;;  %v1715_v34 = vrot.slane %v1714_v51, 4  ;;  %v1538_v25 = vadd.f32 %v1537_v61, %v1536_v48  ;;  %v4751_v21 = vmul.f32 %v4523_v57, %v1525_v26 }
 0x2a5   :  { %v1693_v3 = vrot.slane %v1692_v32, 1  ;;  %v1788_v48 = vsel %vm1784_vm1, %v4659_v46, %v4643_v18  ;;  %v4768_v44 = vmul.f32 %v4523_v57, %v1434_v6  ;;  %v4776_v46 = vmul.f32 %v4523_v57, %v1447_v56 }
 0x2a6   :  { %v1706_v33 = vrot.slane %v1705_v13, 1  ;;  %v1716_v12 = vadd.f32 %v1715_v34, %v1714_v51  ;;  %v4745_v51 = vmul.f32 %v4523_v57, %v1629_v42  ;;  %v4765_v4 = vmul.f32 %v4523_v57, %v1538_v25 }
 0x2a7   :  { %v1694_v62 = vadd.f32 %v1693_v3, %v1692_v32  ;;  %v1760_v32 = vmul.f32 %v4733_v35, %v4733_v35  ;;  %v1805_v37 = vsel %vm1799_vm2, %v1788_v48, 0.0  ;;  %v1761_v61 = vmul.f32 %v4768_v44, %v4768_v44 }
 0x2a8   :  { %v1707_v53 = vadd.f32 %v1706_v33, %v1705_v13  ;;  %v1717_v24 = vrot.slane %v1716_v12, 2  ;;  %v1802_v13 = vadd.f32 %v4663_v60, %v4650_v45  ;;  %v1850_v18 = vmul.f32 %v4745_v51, %v4745_v51 }
 0x2a9   :  { %v4724_v50 = vmul.f32 %v4523_v57, %v1694_v62  ;;  %v1789_v60 = vsel %vm1784_vm1, %v1767_v47, %v1760_v32  ;;  %v1769_v41 = vmul.f32 %v4765_v4, %v4765_v4 }
 0x2aa   :  { %v1718_v22 = vadd.f32 %v1717_v24, %v1716_v12  ;;  %v4730_v17 = vmul.f32 %v4523_v57, %v1707_v53  ;;  %v1804_v3 = vadd.f32 %v4666_v29, %v1802_v13  ;;  %v1768_v29 = vmul.f32 %v4751_v21, %v4751_v21 }
 0x2ab   :  { %v1855_v5 = vmul.f32 %v4724_v50, %v4724_v50  ;;  %v1762_v53 = vmul.f32 %v4776_v46, %v4776_v46 }
 0x2ac   :  { %v1719_v49 = vrot.slane %v1718_v22, 1  ;;  %v1856_v8 = vmul.f32 %v4730_v17, %v4730_v17  ;;  %v1806_v24 = vadd.f32 %v1805_v37, %v1804_v3  ;;  %v1790_v59 = vsel %vm1784_vm1, %v1768_v29, %v1761_v61 }
 0x2ad   :  { %v1876_v14 = vsel %vm1784_vm1, %v1855_v5, %v1848_v38  ;;  %v1791_v54 = vsel %vm1784_vm1, %v1769_v41, %v1762_v53  ;;  %v1809_v42 = vsel %vm1799_vm2, %v1790_v59, 0.0 }
 0x2ae   :  { %v1720_v11 = vadd.f32 %v1719_v49, %v1718_v22  ;;  %v1893_v31 = vsel %vm1799_vm2, %v1876_v14, 0.0  ;;  %v1877_v55 = vsel %vm1784_vm1, %v1856_v8, %v1849_v19  ;;  %v1811_v22 = vsel %vm1799_vm2, %v1791_v54, 0.0 }
 0x2af   :  { %v1894_v30 = vadd.f32 %v1893_v31, %v1892_v0  ;;  %v1895_v23 = vsel %vm1799_vm2, %v1877_v55, 0.0 }
 0x2b0   :  { %v4761_v34 = vmul.f32 %v4523_v57, %v1720_v11  ;;  %v1807_v57 = vsel %vm1799_vm2, %v1789_v60, 0.0 }
 0x2b1   :  { %v1896_v12 = vadd.f32 %v1895_v23, %v1894_v30  ;;  %v1808_v63 = vadd.f32 %v1807_v57, %v1806_v24 }
 0x2b2   :  { %v1857_v45 = vmul.f32 %v4761_v34, %v4761_v34 }
 0x2b3   :  { %v1810_v26 = vadd.f32 %v1809_v42, %v1808_v63 }
 0x2b4   :  { %v1878_v33 = vsel %vm1784_vm1, %v1857_v45, %v1850_v18 }
 0x2b5   :  { %v1897_v20 = vsel %vm1799_vm2, %v1878_v33, 0.0  ;;  %v1812_v38 = vadd.f32 %v1811_v22, %v1810_v26 }
 0x2b6   :  { %v1898_v62 = vadd.f32 %v1897_v20, %v1896_v12 }
 0x2b8   :  { %1899 = vadd.xlane.f32.xlu0 %v1898_v62 }
 0x2c0   :  { %1813 = vadd.xlane.f32.xlu0 %v1812_v38 }
 0x32b   :  { %v1900_v5 = vpop.xlane.xlu0 %1899 }
 0x32c   :  { %v1901_v25 = vmax.f32 %v1900_v5, 1e-24 }
 0x32e   :  { %3857 = vrsqrt.f32 %v1901_v25  ;;  %vm1908_vm4 = vweird.f32 %v1901_v25 }
 0x333   :  { %v1814_v49 = vpop.xlane.xlu0 %1813 }
 0x334   :  { %v3858_v8 = vpop.eup %3857  ;;  %v1815_v0 = vmax.f32 %v1814_v49, 1e-24 }
 0x335   :  { %v1903_v6 = vmul.f32 %v3858_v8, %v1901_v25  ;;  %vm1909_vm3 = vweird.f32 %v3858_v8 }
 0x336   :  { %3859 = vrsqrt.f32 %v1815_v0  ;;  %vm1910_vm5 = vmor %vm1908_vm4, %vm1909_vm3  ;;  %vm1822_vm7 = vweird.f32 %v1815_v0 }
 0x337   :  { %v1904_v56 = vmul.f32 %v3858_v8, %v1903_v6 }
 0x339   :  { %v1905_v14 = vmul.f32 0.5, %v1904_v56 }
 0x33b   :  { %v1906_v47 = vsub.f32 1.5, %v1905_v14  ;;  %v5306_v14 = vld [vmem:[#allocation6_spill] sm:$0xff] }
 0x33c   :  { %v3860_v11 = vpop.eup %3859 }
 0x33d   :  { %v1907_v19 = vmul.f32 %v3858_v8, %v1906_v47  ;;  %v1817_v31 = vmul.f32 %v3860_v11, %v1815_v0  ;;  %vm1823_vm6 = vweird.f32 %v3860_v11 }
 0x33e   :  { %vm1824_vm8 = vmor %vm1822_vm7, %vm1823_vm6 }
 0x33f   :  { %v4796_v32 = vsel %vm1910_vm5, %v3858_v8, %v1907_v19  ;;  %v1818_v48 = vmul.f32 %v3860_v11, %v1817_v31  ;;  %v5307_v19 = vld [vmem:[#allocation5_spill] sm:$0xff] }
 0x340   :  { %v4799_v13 = vrot.slane %v4796_v32, 1  ;;  %v1916_v55 = vmul.f32 %v4796_v32, %v4584_v9  ;;  %v1917_v3 = vmul.f32 %v4796_v32, %v4587_v15  ;;  %v4811_v37 = vmul.f32 %v4796_v32, %v4623_v40 }
 0x341   :  { %v1819_v30 = vmul.f32 0.5, %v1818_v48 }
 0x342   :  { %v1923_v18 = vmul.f32 %v4799_v13, %v4568_v36  ;;  %v1924_v45 = vmul.f32 %v4799_v13, %v4571_v28  ;;  %v2010_v23 = vpack.c.bf16 %v1916_v55, %v1916_v55  ;;  %v4815_v9 = vmul.f32 %v4799_v13, %v4608_v27 }
 0x343   :  { %v1820_v60 = vsub.f32 1.5, %v1819_v30  ;;  %v2011_v29 = vpack.c.bf16 %v1917_v3, %v1917_v3  ;;  %v2012_v40 = vpack.c.bf16 %v4811_v37, %v4811_v37  ;;  %v4825_v27 = vmul.f32 %v4796_v32, %v4615_v52 }
 0x344   :  { %v2017_v33 = vpack.c.bf16 %v1923_v18, %v1923_v18  ;;  %v2018_v12 = vpack.c.bf16 %v1924_v45, %v1924_v45  ;;  %v2019_v36 = vpack.c.bf16 %v4815_v9, %v4815_v9  ;;  %v2094_v57 = vunpack.c.l.b16 %v2010_v23  ;;  %v5308_v23 = vld [vmem:[#allocation7_spill] sm:$0xff] }
 0x345   :  { %v1821_v15 = vmul.f32 %v3860_v11, %v1820_v60  ;;  %v2095_v59 = vunpack.c.l.b16 %v2011_v29  ;;  %v4836_v42 = vmul.f32 %v4799_v13, %v4618_v2  ;;  %v2013_v30 = vpack.c.bf16 %v4825_v27, %v4825_v27 }
 0x346   :  { %v2101_v28 = vunpack.c.l.b16 %v2017_v33  ;;  %v2102_v41 = vunpack.c.l.b16 %v2018_v12  ;;  %v2103_v63 = vunpack.c.l.b16 %v2019_v36  ;;  %v4873_v60 = vmul.f32 %v4799_v13, %v4724_v50 }
 0x347   :  { %v4819_v20 = vsel %vm1824_vm8, %v3860_v11, %v1821_v15  ;;  %v2096_v11 = vunpack.c.l.b16 %v2012_v40 }
 0x348   :  { %v4828_v62 = vrot.slane %v4819_v20, 1  ;;  %v1830_v61 = vmul.f32 %v4819_v20, %v4555_v1  ;;  %v2108_v53 = vrot.slane %v2101_v28, 7  ;;  %v1831_v24 = vmul.f32 %v4819_v20, %v4558_v16 }
 0x349   :  { %v2110_v54 = vrot.slane %v2102_v41, 7  ;;  %v4856_v47 = vmul.f32 %v4819_v20, %v5306_v14  ;;  %v4877_v33 = vmul.f32 %v4819_v20, %v5308_v23  ;;  %v1922_v14 = vmul.f32 %v4796_v32, %v4745_v51 }
 0x34a   :  { %v1837_v52 = vmul.f32 %v4828_v62, %v4561_v7  ;;  %v4840_v22 = vmul.f32 %v1916_v55, %v1830_v61  ;;  %v2109_v26 = vsel %vm1784_vm1, %v2108_v53, %v2094_v57  ;;  %v1838_v1 = vmul.f32 %v4828_v62, %v4576_v43  ;;  %v5309_v57 = vld [vmem:[#allocation8_spill] sm:$0xff] }
 0x34b   :  { %v2122_v38 = vpack.c.b16 %v2109_v26, %v2109_v26  ;;  %v4845_v5 = vmul.f32 %v1917_v3, %v1831_v24  ;;  %v2111_v16 = vsel %vm1784_vm1, %v2110_v54, %v2095_v59  ;;  %v1996_v25 = vpack.c.bf16 %v1830_v61, %v1830_v61 }
 0x34c   :  { %v4848_v49 = vmul.f32 %v1923_v18, %v1837_v52  ;;  %v4850_v2 = vmul.f32 %v1924_v45, %v1838_v1  ;;  %v2123_v8 = vpack.c.b16 %v2111_v16, %v2111_v16  ;;  %v2003_v0 = vpack.c.bf16 %v1837_v52, %v1837_v52 }
 0x34d   :  { %2143 = vmatpush.bf16.xpose.msrb.mxu3 %v2122_v38  ;;  %v2112_v7 = vrot.slane %v2103_v63, 7  ;;  %v2004_v56 = vpack.c.bf16 %v1838_v1, %v1838_v1  ;;  %v2020_v43 = vpack.c.bf16 %v4836_v42, %v4836_v42  ;;  %v4860_v31 = vmul.f32 %v4828_v62, %v5307_v19 }
 0x34e   :  { %v2045_v6 = vunpack.c.l.b16 %v2003_v0  ;;  %v2038_v48 = vunpack.c.l.b16 %v1996_v25  ;;  %v4866_v3 = vmul.f32 %v4796_v32, %v4716_v10  ;;  %v1998_v10 = vpack.c.bf16 %v4856_v47, %v4856_v47 }
 0x34f   :  { %v2113_v18 = vsel %vm1784_vm1, %v2112_v7, %v2096_v11  ;;  %v2005_v45 = vpack.c.bf16 %v4860_v31, %v4860_v31  ;;  %v2046_v15 = vunpack.c.l.b16 %v2004_v56  ;;  %v2104_v29 = vunpack.c.l.b16 %v2020_v43 }
 0x350   :  { %v2052_v55 = vrot.slane %v2045_v6, 7  ;;  %v1997_v28 = vpack.c.bf16 %v1831_v24, %v1831_v24  ;;  %v4886_v40 = vmul.f32 %v4828_v62, %v5309_v57  ;;  %v2124_v50 = vpack.c.b16 %v2113_v18, %v2113_v18 }
 0x351   :  { %v2047_v41 = vunpack.c.l.b16 %v2005_v45  ;;  %v2097_v61 = vunpack.c.l.b16 %v2013_v30  ;;  %v1999_v53 = vpack.c.bf16 %v4877_v33, %v4877_v33  ;;  %v4892_v59 = vmul.f32 %v4796_v32, %v4727_v58 }
 0x352   :  { %v2053_v12 = vsel %vm1784_vm1, %v2052_v55, %v2038_v48  ;;  %v1958_v54 = vrot.slane %v4848_v49, 7  ;;  %v2006_v24 = vpack.c.bf16 %v4886_v40, %v4886_v40  ;;  %v1834_v52 = vmul.f32 %v4819_v20, %v4733_v35 }
 0x353   :  { %v4882_v36 = vpack.c.b16 %v2053_v12, %v2053_v12  ;;  %v2056_v63 = vrot.slane %v2047_v41, 7  ;;  %v2054_v26 = vrot.slane %v2046_v15, 7  ;;  %v2114_v1 = vrot.slane %v2104_v29, 7 }
 0x354   :  { %v2040_v38 = vunpack.c.l.b16 %v1998_v10  ;;  %v1841_v16 = vmul.f32 %v4828_v62, %v4721_v39  ;;  %v1960_v58 = vrot.slane %v4850_v2, 7  ;;  %v2039_v25 = vunpack.c.l.b16 %v1997_v28 }
 0x355   :  { %2156 = vmatpush.bf16.xpose.msra.mxu3 %v2123_v8  ;;  %v2021_v8 = vpack.c.bf16 %v4873_v60, %v4873_v60  ;;  %v2048_v0 = vunpack.c.l.b16 %v2006_v24  ;;  %v2041_v6 = vunpack.c.l.b16 %v1999_v53  ;;  %v2000_v56 = vpack.c.bf16 %v1834_v52, %v1834_v52 }
 0x356   :  { %2144 = vmatmul.bf16.vlgmr.msrb.gmra.mxu3 %v4882_v36  ;;  %v2057_v7 = vsel %vm1784_vm1, %v2056_v63, %v2040_v38  ;;  %v2007_v43 = vpack.c.bf16 %v1841_v16, %v1841_v16  ;;  %v1929_v11 = vmul.f32 %v4799_v13, %v4761_v34  ;;  %v1835_v39 = vmul.f32 %v4819_v20, %v4768_v44 }
 0x357   :  { %v2058_v35 = vrot.slane %v2048_v0, 7  ;;  %v2055_v19 = vsel %vm1784_vm1, %v2054_v26, %v2039_v25  ;;  %v2115_v48 = vsel %vm1784_vm1, %v2114_v1, %v2097_v61  ;;  %v1842_v30 = vmul.f32 %v4828_v62, %v4751_v21 }
 0x358   :  { %v2049_v55 = vunpack.c.l.b16 %v2007_v43  ;;  %v4916_v18 = vpack.c.b16 %v2057_v7, %v2057_v7  ;;  %v2016_v23 = vpack.c.bf16 %v1922_v14, %v1922_v14  ;;  %v2023_v51 = vpack.c.bf16 %v1929_v11, %v1929_v11 }
 0x359   :  { %v2059_v45 = vsel %vm1784_vm1, %v2058_v35, %v2041_v6  ;;  %v2042_v32 = vunpack.c.l.b16 %v2000_v56  ;;  %v2001_v34 = vpack.c.bf16 %v1835_v39, %v1835_v39  ;;  %v2008_v15 = vpack.c.bf16 %v1842_v30, %v1842_v30 }
 0x35a   :  { %v2060_v12 = vrot.slane %v2049_v55, 7  ;;  %v4919_v29 = vpack.c.b16 %v2055_v19, %v2055_v19  ;;  %v2125_v44 = vpack.c.b16 %v2115_v48, %v2115_v48  ;;  %v4921_v10 = vpack.c.b16 %v2059_v45, %v2059_v45 }
 0x35b   :  { %v2107_v28 = vunpack.c.l.b16 %v2023_v51  ;;  %v2050_v57 = vunpack.c.l.b16 %v2008_v15  ;;  %v1836_v21 = vmul.f32 %v4819_v20, %v4776_v46  ;;  %v2100_v61 = vunpack.c.l.b16 %v2016_v23 }
 0x35c   :  { %v2061_v41 = vsel %vm1784_vm1, %v2060_v12, %v2042_v32  ;;  %v1843_v63 = vmul.f32 %v4828_v62, %v4765_v4  ;;  %v2043_v24 = vunpack.c.l.b16 %v2001_v34  ;;  %v4932_v38 = vsel %vm2245_vm9, %v4916_v18, 0 }
 0x35d   :  { %2169 = vmatpush.bf16.xpose.msrb.mxu3 %v2124_v50  ;;  %v4926_v50 = vpack.c.b16 %v2061_v41, %v2061_v41  ;;  %v2120_v53 = vrot.slane %v2107_v28, 7  ;;  %v2062_v26 = vrot.slane %v2050_v57, 7  ;;  %v2002_v1 = vpack.c.bf16 %v1836_v21, %v1836_v21 }
 0x35e   :  { %v2009_v0 = vpack.c.bf16 %v1843_v63, %v1843_v63  ;;  %v4939_v46 = vsel %vm2245_vm9, %v4921_v10, 0  ;;  %v1928_v4 = vmul.f32 %v4799_v13, %v4730_v17  ;;  %v1932_v6 = vmul.f32 %v4811_v37, %v4856_v47 }
 0x35f   :  { %v4935_v25 = vsel %vm1784_vm1, %v2120_v53, %v2100_v61  ;;  %v4943_v20 = vsel %vm2245_vm9, %v4926_v50, 0  ;;  %v2063_v62 = vsel %vm1784_vm1, %v2062_v26, %v2043_v24  ;;  %v2044_v7 = vunpack.c.l.b16 %v2002_v1 }
 0x360   :  { %v2071_v56 = vpack.c.b16 %v2063_v62, %v2063_v62  ;;  %v2051_v43 = vunpack.c.l.b16 %v2009_v0  ;;  %v1933_v35 = vmul.f32 %v4825_v27, %v4877_v33  ;;  %v1934_v19 = vmul.f32 %v4866_v3, %v1834_v52 }
 0x361   :  { %v1935_v48 = vmul.f32 %v4892_v59, %v1835_v39  ;;  %v1936_v55 = vmul.f32 %v1922_v14, %v1836_v21  ;;  %v1939_v45 = vmul.f32 %v4815_v9, %v4860_v31  ;;  %v1940_v17 = vmul.f32 %v4836_v42, %v4886_v40 }
 0x362   :  { %v2064_v13 = vrot.slane %v2051_v43, 7  ;;  %v4960_v37 = vsel %vm2245_vm9, %v2071_v56, 0  ;;  %v1941_v47 = vmul.f32 %v4873_v60, %v1841_v16  ;;  %v1942_v27 = vmul.f32 %v1928_v4, %v1842_v30 }
 0x363   :  { %v1943_v33 = vmul.f32 %v1929_v11, %v1843_v63  ;;  %v1959_v52 = vsel %vm1784_vm1, %v1958_v54, %v4840_v22  ;;  %v1961_v9 = vsel %vm1784_vm1, %v1960_v58, %v4845_v5  ;;  %v1962_v42 = vrot.slane %v1939_v45, 7 }
 0x364   :  { %v2065_v31 = vsel %vm1784_vm1, %v2064_v13, %v2044_v7  ;;  %v1964_v40 = vrot.slane %v1940_v17, 7  ;;  %v1966_v14 = vrot.slane %v1941_v47, 7  ;;  %v1968_v39 = vrot.slane %v1942_v27, 7 }
 0x365   :  { %v2105_v16 = vunpack.c.l.b16 %v2021_v8  ;;  %v1963_v11 = vsel %vm1784_vm1, %v1962_v42, %v1932_v6  ;;  %v1970_v49 = vrot.slane %v1943_v33, 7  ;;  %v1979_v22 = vsel %vm1799_vm2, %v1959_v52, 0.0 }
 0x366   :  { %2157 = vmatmul.bf16.vlgmr.msra.gmra.mxu3 %v4919_v29  ;;  %v1965_v54 = vsel %vm1784_vm1, %v1964_v40, %v1933_v35  ;;  %v1967_v2 = vsel %vm1784_vm1, %v1966_v14, %v1934_v19  ;;  %v1969_v5 = vsel %vm1784_vm1, %v1968_v39, %v1935_v48  ;;  %v1980_v58 = vsel %vm1799_vm2, %v1961_v9, 0.0 }
 0x367   :  { %2182 = vmatpush.bf16.xpose.msra.mxu3 %v2125_v44  ;;  %v1971_v30 = vsel %vm1784_vm1, %v1970_v49, %v1936_v55  ;;  %v1981_v23 = vadd.f32 %v1980_v58, %v1979_v22  ;;  %v2014_v60 = vpack.c.bf16 %v4866_v3, %v4866_v3  ;;  %v1982_v8 = vsel %vm1799_vm2, %v1963_v11, 0.0 }
 0x368   :  { %v2116_v32 = vrot.slane %v2105_v16, 7  ;;  %v1984_v12 = vsel %vm1799_vm2, %v1965_v54, 0.0  ;;  %v1986_v44 = vsel %vm1799_vm2, %v1967_v2, 0.0  ;;  %v1988_v57 = vsel %vm1799_vm2, %v1969_v5, 0.0 }
 0x369   :  { %v1983_v51 = vadd.f32 %v1982_v8, %v1981_v23  ;;  %v2098_v15 = vunpack.c.l.b16 %v2014_v60  ;;  %v1990_v61 = vsel %vm1799_vm2, %v1971_v30, 0.0  ;;  %v2022_v63 = vpack.c.bf16 %v1928_v4, %v1928_v4 }
 0x36a   :  { %v2015_v26 = vpack.c.bf16 %v4892_v59, %v4892_v59  ;;  %v2128_v6 = vpack.c.b16 %v4935_v25, %v4935_v25  ;;  %v2072_v59 = vpack.c.b16 %v2065_v31, %v2065_v31  ;;  %v2250_v4 = vsel %vm2245_vm9, %v4919_v29, 0 }
 0x36b   :  { %v1985_v34 = vadd.f32 %v1984_v12, %v1983_v51  ;;  %v2117_v41 = vsel %vm1784_vm1, %v2116_v32, %v2098_v15  ;;  %v2106_v24 = vunpack.c.l.b16 %v2022_v63  ;;  %v3786_v12 = vld [vmem:[%s5282_s2 + $0x38] sm:$0xff]  ;;  %v3792_v63 = vld [vmem:[%s5282_s2 + $0x68] sm:$0xff] }
 0x36c   :  { %v2126_v53 = vpack.c.b16 %v2117_v41, %v2117_v41  ;;  %v2099_v0 = vunpack.c.l.b16 %v2015_v26  ;;  %v2265_v58 = vsel %vm2245_vm9, %v2072_v59, 0  ;;  %v3802_v15 = vld [vmem:[%s5282_s2 + $0xb8] sm:$0xff]  ;;  %v3793_v41 = vld [vmem:[%s5282_s2 + $0x70] sm:$0xff] }
 0x36d   :  { %v1987_v28 = vadd.f32 %v1986_v44, %v1985_v34  ;;  %v2118_v1 = vrot.slane %v2106_v24, 7  ;;  %v3794_v34 = vld [vmem:[%s5282_s2 + $0x78] sm:$0xff]  ;;  %2883 = vmatpush.bf16.msra.mxu1 %v3802_v15  ;;  %v3833_v15 = vld [vmem:[%s5282_s2 + $0x1b0] sm:$0xff] }
 0x36e   :  { %2870 = vmatpush.bf16.msra.mxu0 %v3794_v34 }
 0x36f   :  { %v1989_v21 = vadd.f32 %v1988_v57, %v1987_v28  ;;  %v2119_v62 = vsel %vm1784_vm1, %v2118_v1, %v2099_v0  ;;  %v3785_v28 = vld [vmem:[%s5282_s2 + $0x30] sm:$0xff]  ;;  %v3800_v1 = vld [vmem:[%s5282_s2 + $0xa8] sm:$0xff] }
 0x370   :  { %v2127_v7 = vpack.c.b16 %v2119_v62, %v2119_v62  ;;  %v3801_v57 = vld [vmem:[%s5282_s2 + $0xb0] sm:$0xff] }
 0x371   :  { %v4990_v3 = vadd.f32 %v1990_v61, %v1989_v21  ;;  %v3810_v21 = vld [vmem:[%s5282_s2 + $0xf8] sm:$0xff]  ;;  %2884 = vmatpush.bf16.msra.mxu1 %v3801_v57  ;;  %v3809_v0 = vld [vmem:[%s5282_s2 + $0xf0] sm:$0xff]  ;;  %v3824_v57 = vld [vmem:[%s5282_s2 + $0x168] sm:$0xff] }
 0x372   :  { %2871 = vmatpush.bf16.msra.mxu0 %v3793_v41  ;;  %2896 = vmatpush.bf16.msra.mxu2 %v3810_v21  ;;  %v3816_v41 = vld [vmem:[%s5282_s2 + $0x128] sm:$0xff] }
 0x373   :  { %v3832_v21 = vld [vmem:[%s5282_s2 + $0x1a8] sm:$0xff] }
 0x375   :  { %2885 = vmatpush.bf16.msra.mxu1 %v3800_v1 }
 0x376   :  { %2170 = vmatmul.bf16.vlgmr.msrb.gmra.mxu3 %v4916_v18  ;;  %v2247_v18 = vsel %vm2245_vm9, %v4882_v36, 0  ;;  %2872 = vmatpush.bf16.msra.mxu0 %v3792_v63  ;;  %v3823_v63 = vld [vmem:[%s5282_s2 + $0x160] sm:$0xff] }
 0x377   :  { %2195 = vmatpush.bf16.xpose.msrb.mxu3 %v2126_v53  ;;  %v3784_v53 = vld [vmem:[%s5282_s2 + $0x28] sm:$0xff]  ;;  %2897 = vmatpush.bf16.msra.mxu2 %v3809_v0 }
 0x386   :  { %2183 = vmatmul.bf16.vlgmr.msra.gmra.mxu3 %v4921_v10 }
 0x387   :  { %2208 = vmatpush.bf16.xpose.msra.mxu3 %v2127_v7 }
 0x396   :  { %2196 = vmatmul.bf16.vlgmr.msrb.gmra.mxu3 %v4926_v50 }
 0x397   :  { %2221 = vmatpush.bf16.xpose.msrb.mxu3 %v2128_v6 }
 0x3a6   :  { %2209 = vmatmul.bf16.vlgmr.msra.gmra.mxu3 %v2071_v56 }
 0x3a7   :  { %2274 = vmatpush.bf16.msra.mxu3 %v2247_v18  ;;  %v3783_v18 = vld [vmem:[%s5282_s2 + $0x20] sm:$0xff] }
 0x3b6   :  { %2222 = vmatmul.bf16.vlgmr.msrb.gmra.mxu3 %v2072_v59  ;;  %v3791_v59 = vld [vmem:[%s5282_s2 + $0x60] sm:$0xff] }
 0x3b7   :  { %2287 = vmatpush.bf16.msrb.mxu3 %v2250_v4  ;;  %2873 = vmatpush.bf16.msra.mxu0 %v3791_v59 }
 0x3d9   :  { %v2145_v43 = vpop.f32.mrf.mxu3 }
 0x3e1   :  { %v2147_v10 = vpop.f32.mrf.mxu3 }
 0x3e9   :  { %v2158_v35 = vpop.f32.mrf.mxu3 }
 0x3ea   :  { %v2159_v19 = vadd.f32 %v2158_v35, %v2145_v43  ;;  %v3799_v35 = vld [vmem:[%s5282_s2 + $0xa0] sm:$0xff] }
 0x3eb   :  { %2886 = vmatpush.bf16.msra.mxu1 %v3799_v35 }
 0x3f1   :  { %v2160_v48 = vpop.f32.mrf.mxu3 }
 0x3f9   :  { %v2171_v25 = vpop.f32.mrf.mxu3 }
 0x3fa   :  { %v2172_v47 = vadd.f32 %v2171_v25, %v2159_v19 }
 0x401   :  { %v2173_v55 = vpop.f32.mrf.mxu3 }
 0x409   :  { %v2184_v50 = vpop.f32.mrf.mxu3 }
 0x40a   :  { %v2185_v27 = vadd.f32 %v2184_v50, %v2172_v47  ;;  %v3782_v50 = vld [vmem:[%s5282_s2 + $0x18] sm:$0xff] }
 0x411   :  { %v2186_v45 = vpop.f32.mrf.mxu3 }
 0x412   :  { %v3790_v45 = vld [vmem:[%s5282_s2 + $0x58] sm:$0xff] }
 0x413   :  { %2874 = vmatpush.bf16.msra.mxu0 %v3790_v45 }
 0x419   :  { %v2197_v56 = vpop.f32.mrf.mxu3 }
 0x41a   :  { %v2198_v33 = vadd.f32 %v2197_v56, %v2185_v27 }
 0x421   :  { %v2199_v17 = vpop.f32.mrf.mxu3 }
 0x422   :  { %v3798_v17 = vld [vmem:[%s5282_s2 + $0x98] sm:$0xff] }
 0x423   :  { %2887 = vmatpush.bf16.msra.mxu1 %v3798_v17 }
 0x429   :  { %v2210_v13 = vpop.f32.mrf.mxu3 }
 0x42a   :  { %v2211_v52 = vadd.f32 %v2210_v13, %v2198_v33 }
 0x431   :  { %v2212_v36 = vpop.f32.mrf.mxu3 }
 0x439   :  { %v2223_v9 = vpop.f32.mrf.mxu3 }
 0x43a   :  { %v2224_v29 = vadd.f32 %v2223_v9, %v2211_v52 }
 0x43c   :  { %v2227_v42 = vmul.f32 0.035714287, %v2224_v29 }
 0x43e   :  { %v2229_v31 = vsel %vm2228_vm10, %v2227_v42, -inf }
 0x43f   :  { %2230 = vmax.xlane.f32.xlu1 %v2229_v31  ;;  %v3781_v31 = vld [vmem:[%s5282_s2 + $0x10] sm:$0xff] }
 0x441   :  { %v2225_v40 = vpop.f32.mrf.mxu3 }
 0x442   :  { %v3789_v40 = vld [vmem:[%s5282_s2 + $0x50] sm:$0xff] }
 0x443   :  { %2875 = vmatpush.bf16.msra.mxu0 %v3789_v40  ;;  %v3842_v40 = vld [vmem:[%s5285_s4 + $0x38] sm:$0xff] }
 0x4b2   :  { %v2231_v14 = vpop.xlane.xlu1 %2230 }
 0x4b3   :  { %v2232_v39 = vsub.f32 %v2227_v42, %v2231_v14  ;;  %v3797_v14 = vld [vmem:[%s5282_s2 + $0x90] sm:$0xff] }
 0x4b4   :  { %2888 = vmatpush.bf16.msra.mxu1 %v3797_v14  ;;  %v3841_v14 = vld [vmem:[%s5285_s4 + $0x30] sm:$0xff] }
 0x4b5   :  { %v2233_v16 = vmul.f32 1.442695, %v2232_v39  ;;  %v3808_v39 = vld [vmem:[%s5282_s2 + $0xe8] sm:$0xff] }
 0x4b6   :  { %2898 = vmatpush.bf16.msra.mxu2 %v3808_v39  ;;  %v3837_v39 = vld [vmem:[%s5285_s4 + $0x10] sm:$0xff] }
 0x4b7   :  { %3861 = vpow2.f32 %v2233_v16  ;;  %v3788_v16 = vld [vmem:[%s5282_s2 + $0x48] sm:$0xff] }
 0x4b8   :  { %2876 = vmatpush.bf16.msra.mxu0 %v3788_v16 }
 0x4bd   :  { %v3862_v11 = vpop.eup %3861 }
 0x4be   :  { %v2235_v49 = vsel %vm2228_vm10, %v3862_v11, 0.0 }
 0x4bf   :  { %2236 = vadd.xlane.f32.xlu1 %v2235_v49  ;;  %v3807_v49 = vld [vmem:[%s5282_s2 + $0xe0] sm:$0xff] }
 0x4c0   :  { %2899 = vmatpush.bf16.msra.mxu2 %v3807_v49  ;;  %v3850_v49 = vld [vmem:[%s5286_s6 + $0x38] sm:$0xff] }
 0x532   :  { %v2237_v22 = vpop.xlane.xlu1 %2236 }
 0x533   :  { %3863 = vrcp.f32 %v2237_v22  ;;  %v3779_v22 = vld [vmem:[%s5282_s2] sm:$0xff] }
 0x539   :  { %v3864_v54 = vpop.eup %3863 }
 0x53a   :  { %v2239_v2 = vmul.f32 %v3864_v54, %v3862_v11  ;;  %v3796_v11 = vld [vmem:[%s5282_s2 + $0x88] sm:$0xff]  ;;  %v3787_v54 = vld [vmem:[%s5282_s2 + $0x40] sm:$0xff] }
 0x53b   :  { %2889 = vmatpush.bf16.msra.mxu1 %v3796_v11  ;;  %2877 = vmatpush.bf16.msra.mxu0 %v3787_v54  ;;  %v3836_v11 = vld [vmem:[%s5285_s4 + $0x8] sm:$0xff]  ;;  %v3852_v54 = vld [vmem:[%s5283_s3] ss:$0 sm:$0xff] }
 0x53c   :  { %v2240_v5 = vpack.c.bf16 %v2239_v2, %v2239_v2  ;;  %v3795_v2 = vld [vmem:[%s5282_s2 + $0x80] sm:$0xff] }
 0x53e   :  { %3412 = vmatmul.msk.bf16.vlgmr.msra.gmra.mxu3 %vm2241_vm11, %v2240_v5 }
 0x53f   :  { %2300 = vmatpush.bf16.msra.mxu3 %v4932_v38  ;;  %2890 = vmatpush.bf16.msra.mxu1 %v3795_v2  ;;  %v3835_v2 = vld [vmem:[%s5285_s4] sm:$0xff] }
 0x54e   :  { %3413 = vmatmul.msk.bf16.vlgmr.msrb.gmra.mxu3 %vm2241_vm11, %v2240_v5 }
 0x54f   :  { %2313 = vmatpush.bf16.msrb.mxu3 %v4939_v46 }
 0x55e   :  { %3414 = vmatmul.msk.bf16.vlgmr.msra.gmra.mxu3 %vm2241_vm11, %v2240_v5 }
 0x55f   :  { %2326 = vmatpush.bf16.msra.mxu3 %v4943_v20 }
 0x56e   :  { %3415 = vmatmul.msk.bf16.vlgmr.msrb.gmra.mxu3 %vm2241_vm11, %v2240_v5 }
 0x56f   :  { %2339 = vmatpush.bf16.msrb.mxu3 %v4960_v37 }
 0x57e   :  { %3416 = vmatmul.msk.bf16.vlgmr.msra.gmra.mxu3 %vm2241_vm11, %v2240_v5 }
 0x57f   :  { %2352 = vmatpush.bf16.msra.mxu3 %v2265_v58  ;;  %v3818_v58 = vld [vmem:[%s5282_s2 + $0x138] sm:$0xff] }
 0x58e   :  { %3417 = vmatmul.msk.bf16.vlgmr.msrb.gmra.mxu3 %vm2241_vm11, %v2240_v5 }
 0x58f   :  { %2857 = vmatpush.bf16.msrb.mxu3 %v3786_v12  ;;  %v3825_v12 = vld [vmem:[%s5282_s2 + $0x170] sm:$0xff] }
 0x593   :  { %2858 = vmatpush.bf16.msrb.mxu3 %v3785_v28  ;;  %v3804_v28 = vld [vmem:[%s5282_s2 + $0xc8] sm:$0xff] }
 0x597   :  { %2859 = vmatpush.bf16.msrb.mxu3 %v3784_v53  ;;  %v3815_v53 = vld [vmem:[%s5282_s2 + $0x120] sm:$0xff] }
 0x59b   :  { %2860 = vmatpush.bf16.msrb.mxu3 %v3783_v18 }
 0x59e   :  { %3418 = vmatmul.msk.bf16.vlgmr.msra.gmra.mxu3 %vm2241_vm11, %v2240_v5  ;;  %v3806_v5 = vld [vmem:[%s5282_s2 + $0xd8] sm:$0xff] }
 0x59f   :  { %2861 = vmatpush.bf16.msrb.mxu3 %v3782_v50  ;;  %2900 = vmatpush.bf16.msra.mxu2 %v3806_v5 }
 0x5a3   :  { %2862 = vmatpush.bf16.msrb.mxu3 %v3781_v31 }
 0x5c1   :  { %v5009_v30 = vpop.f32.mrf.mxu3 }
 0x5c2   :  { %v2358_v24 = vmul.f32 %v5009_v30, %v5009_v30 }
 0x5c4   :  { %v2365_v4 = vsel %vm1799_vm2, %v2358_v24, 0.0 }
 0x5c9   :  { %v2278_v23 = vpop.f32.mrf.mxu3 }
 0x5ca   :  { %v3826_v23 = vld [vmem:[%s5282_s2 + $0x178] sm:$0xff] }
 0x5cb   :  { %2922 = vmatpush.bf16.msrb.mxu0 %v3826_v23  ;;  %v3848_v23 = vld [vmem:[%s5286_s6 + $0x28] sm:$0xff] }
 0x5cf   :  { %2923 = vmatpush.bf16.msrb.mxu0 %v3825_v12 }
 0x5d1   :  { %v5011_v60 = vpop.f32.mrf.mxu3 }
 0x5d2   :  { %v2359_v61 = vmul.f32 %v5011_v60, %v5011_v60 }
 0x5d3   :  { %2924 = vmatpush.bf16.msrb.mxu0 %v3824_v57 }
 0x5d4   :  { %v2366_v62 = vsel %vm1799_vm2, %v2359_v61, 0.0  ;;  %v3803_v61 = vld [vmem:[%s5282_s2 + $0xc0] sm:$0xff] }
 0x5d5   :  { %v2367_v19 = vadd.f32 %v2366_v62, %v2365_v4  ;;  %v3814_v62 = vld [vmem:[%s5282_s2 + $0x118] sm:$0xff]  ;;  %v3813_v4 = vld [vmem:[%s5282_s2 + $0x110] sm:$0xff] }
 0x5d7   :  { %2925 = vmatpush.bf16.msrb.mxu0 %v3823_v63 }
 0x5d9   :  { %v2291_v38 = vpop.f32.mrf.mxu3 }
 0x5da   :  { %v3834_v38 = vld [vmem:[%s5282_s2 + $0x1b8] sm:$0xff] }
 0x5db   :  { %2935 = vmatpush.bf16.msrb.mxu1 %v3834_v38 }
 0x5df   :  { %2936 = vmatpush.bf16.msrb.mxu1 %v3833_v15 }
 0x5e1   :  { %v5013_v8 = vpop.f32.mrf.mxu3 }
 0x5e2   :  { %v2360_v26 = vmul.f32 %v5013_v8, %v5013_v8 }
 0x5e3   :  { %2937 = vmatpush.bf16.msrb.mxu1 %v3832_v21 }
 0x5e4   :  { %v2368_v43 = vsel %vm1799_vm2, %v2360_v26, 0.0  ;;  %v3831_v26 = vld [vmem:[%s5282_s2 + $0x1a0] sm:$0xff] }
 0x5e5   :  { %v2369_v55 = vadd.f32 %v2368_v43, %v2367_v19  ;;  %v3821_v43 = vld [vmem:[%s5282_s2 + $0x150] sm:$0xff] }
 0x5e7   :  { %2938 = vmatpush.bf16.msrb.mxu1 %v3831_v26 }
 0x5e9   :  { %v2304_v46 = vpop.f32.mrf.mxu3 }
 0x5ea   :  { %v3805_v46 = vld [vmem:[%s5282_s2 + $0xd0] sm:$0xff] }
 0x5eb   :  { %2901 = vmatpush.bf16.msra.mxu2 %v3805_v46 }
 0x5ef   :  { %2902 = vmatpush.bf16.msra.mxu2 %v3804_v28  ;;  %v3846_v28 = vld [vmem:[%s5286_s6 + $0x18] sm:$0xff] }
 0x5f1   :  { %v5015_v51 = vpop.f32.mrf.mxu3 }
 0x5f2   :  { %v2361_v7 = vmul.f32 %v5015_v51, %v5015_v51 }
 0x5f3   :  { %2903 = vmatpush.bf16.msra.mxu2 %v3803_v61  ;;  %v3845_v61 = vld [vmem:[%s5286_s6 + $0x10] sm:$0xff] }
 0x5f4   :  { %v2370_v48 = vsel %vm1799_vm2, %v2361_v7, 0.0  ;;  %v3822_v7 = vld [vmem:[%s5282_s2 + $0x158] sm:$0xff] }
 0x5f5   :  { %v2371_v13 = vadd.f32 %v2370_v48, %v2369_v55  ;;  %2926 = vmatpush.bf16.msrb.mxu0 %v3822_v7  ;;  %v3812_v48 = vld [vmem:[%s5282_s2 + $0x108] sm:$0xff] }
 0x5f7   :  { %3018 = vmatpush.bf16.msrb.mxu2 %v3842_v40 }
 0x5f9   :  { %v2317_v20 = vpop.f32.mrf.mxu3  ;;  %2927 = vmatpush.bf16.msrb.mxu0 %v3821_v43  ;;  %v3853_v43 = vld [vmem:[%s5284_s5] ss:$0 sm:$0xff] }
 0x5fb   :  { %3019 = vmatpush.bf16.msrb.mxu2 %v3841_v14 }
 0x601   :  { %v5017_v32 = vpop.f32.mrf.mxu3 }
 0x602   :  { %v2362_v10 = vmul.f32 %v5017_v32, %v5017_v32 }
 0x604   :  { %v2372_v56 = vsel %vm1799_vm2, %v2362_v10, 0.0  ;;  %v3829_v10 = vld [vmem:[%s5282_s2 + $0x190] sm:$0xff] }
 0x605   :  { %v2373_v27 = vadd.f32 %v2372_v56, %v2371_v13 }
 0x609   :  { %v2330_v37 = vpop.f32.mrf.mxu3 }
 0x60a   :  { %v3817_v37 = vld [vmem:[%s5282_s2 + $0x130] sm:$0xff] }
 0x611   :  { %v5028_v44 = vpop.f32.mrf.mxu3 }
 0x612   :  { %v2363_v25 = vmul.f32 %v5028_v44, %v5028_v44 }
 0x614   :  { %v2374_v36 = vsel %vm1799_vm2, %v2363_v25, 0.0  ;;  %v3820_v25 = vld [vmem:[%s5282_s2 + $0x148] sm:$0xff] }
 0x615   :  { %v2375_v52 = vadd.f32 %v2374_v36, %v2373_v27  ;;  %2928 = vmatpush.bf16.msrb.mxu0 %v3820_v25 }
 0x619   :  { %v2343_v6 = vpop.f32.mrf.mxu3 }
 0x61a   :  { %v3830_v6 = vld [vmem:[%s5282_s2 + $0x198] sm:$0xff] }
 0x61b   :  { %2939 = vmatpush.bf16.msrb.mxu1 %v3830_v6 }
 0x61f   :  { %2940 = vmatpush.bf16.msrb.mxu1 %v3829_v10 }
 0x621   :  { %v5090_v47 = vpop.f32.mrf.mxu3 }
 0x622   :  { %v2364_v33 = vmul.f32 %v5090_v47, %v5090_v47 }
 0x624   :  { %v2376_v9 = vsel %vm1799_vm2, %v2364_v33, 0.0  ;;  %v3828_v33 = vld [vmem:[%s5282_s2 + $0x188] sm:$0xff] }
 0x625   :  { %v2377_v29 = vadd.f32 %v2376_v9, %v2375_v52  ;;  %2941 = vmatpush.bf16.msrb.mxu1 %v3828_v33 }
 0x627   :  { %2378 = vadd.xlane.f32.xlu2 %v2377_v29 }
 0x629   :  { %v2356_v42 = vpop.f32.mrf.mxu3 }
 0x62f   :  { %1992 = vadd.xlane.f32.xlu2 %v4990_v3  ;;  %v3780_v3 = vld [vmem:[%s5282_s2 + $0x8] sm:$0xff] }
 0x630   :  { %2863 = vmatpush.bf16.msrb.mxu3 %v3780_v3 }
 0x634   :  { %2864 = vmatpush.bf16.msrb.mxu3 %v3779_v22  ;;  %v3849_v22 = vld [vmem:[%s5286_s6 + $0x30] sm:$0xff] }
 0x638   :  { %2909 = vmatpush.bf16.msra.mxu3 %v3818_v58 }
 0x63c   :  { %2910 = vmatpush.bf16.msra.mxu3 %v3817_v37  ;;  %v3847_v37 = vld [vmem:[%s5286_s6 + $0x20] sm:$0xff] }
 0x640   :  { %2911 = vmatpush.bf16.msra.mxu3 %v3816_v41 }
 0x644   :  { %2912 = vmatpush.bf16.msra.mxu3 %v3815_v53 }
 0x648   :  { %2913 = vmatpush.bf16.msra.mxu3 %v3814_v62 }
 0x64c   :  { %2914 = vmatpush.bf16.msra.mxu3 %v3813_v4  ;;  %v3843_v4 = vld [vmem:[%s5286_s6] sm:$0xff] }
 0x650   :  { %2915 = vmatpush.bf16.msra.mxu3 %v3812_v48 }
 0x69a   :  { %v2379_v20 = vpop.xlane.xlu2 %2378 }
 0x69b   :  { %v2380_v34 = vmax.f32 %v2379_v20, 1e-24 }
 0x69d   :  { %3865 = vrsqrt.f32 %v2380_v34  ;;  %vm2387_vm13 = vweird.f32 %v2380_v34 }
 0x6a3   :  { %v3866_v24 = vpop.eup %3865 }
 0x6a4   :  { %v2382_v1 = vmul.f32 %v3866_v24, %v2380_v34  ;;  %vm2388_vm12 = vweird.f32 %v3866_v24 }
 0x6a5   :  { %vm2389_vm14 = vmor %vm2387_vm13, %vm2388_vm12 }
 0x6a6   :  { %v2383_v0 = vmul.f32 %v3866_v24, %v2382_v1 }
 0x6a8   :  { %v2384_v18 = vmul.f32 0.5, %v2383_v0 }
 0x6aa   :  { %v2385_v59 = vsub.f32 1.5, %v2384_v18 }
 0x6ac   :  { %v2386_v35 = vmul.f32 %v3866_v24, %v2385_v59  ;;  %v3844_v59 = vld [vmem:[%s5286_s6 + $0x8] sm:$0xff] }
 0x6ae   :  { %v2390_v19 = vsel %vm2389_vm14, %v3866_v24, %v2386_v35 }
 0x6af   :  { %v2391_v55 = vmul.f32 %v2390_v19, %v5009_v30  ;;  %v2392_v50 = vmul.f32 %v2390_v19, %v5011_v60  ;;  %v2393_v45 = vmul.f32 %v2390_v19, %v5013_v8  ;;  %v2394_v56 = vmul.f32 %v2390_v19, %v5015_v51  ;;  %v3811_v30 = vld [vmem:[%s5282_s2 + $0x100] sm:$0xff] }
 0x6b0   :  { %v3819_v60 = vld [vmem:[%s5282_s2 + $0x140] sm:$0xff]  ;;  %2916 = vmatpush.bf16.msra.mxu3 %v3811_v30  ;;  %v2395_v51 = vmul.f32 %v2390_v19, %v5017_v32  ;;  %v2396_v52 = vmul.f32 %v2390_v19, %v5028_v44  ;;  %v2397_v9 = vmul.f32 %v2390_v19, %v5090_v47  ;;  %v3840_v32 = vld [vmem:[%s5285_s4 + $0x28] sm:$0xff]  ;;  %v3838_v47 = vld [vmem:[%s5285_s4 + $0x18] sm:$0xff] }
 0x6b1   :  { %v2398_v17 = vpack.c.bf16 %v2391_v55, %v2391_v55  ;;  %v2399_v13 = vpack.c.bf16 %v2392_v50, %v2392_v50  ;;  %v2400_v36 = vpack.c.bf16 %v2393_v45, %v2393_v45  ;;  %v2401_v27 = vpack.c.bf16 %v2394_v56, %v2394_v56  ;;  %v3827_v8 = vld [vmem:[%s5282_s2 + $0x180] sm:$0xff]  ;;  %2929 = vmatpush.bf16.msrb.mxu0 %v3819_v60  ;;  %v1993_v55 = vpop.xlane.xlu2 %1992 }
 0x6b2   :  { %2942 = vmatpush.bf16.msrb.mxu1 %v3827_v8  ;;  %v2402_v29 = vpack.c.bf16 %v2395_v51, %v2395_v51  ;;  %v2403_v42 = vpack.c.bf16 %v2396_v52, %v2396_v52  ;;  %v2404_v31 = vpack.c.bf16 %v2397_v9, %v2397_v9  ;;  %3020 = vmatpush.bf16.msrb.mxu2 %v3840_v32  ;;  %v3839_v44 = vld [vmem:[%s5285_s4 + $0x20] sm:$0xff]  ;;  %v3114_v50 = vlaneseq }
 0x6b3   :  { %2865 = vmatmul.bf16.vlgmr.msrb.gmra.mxu3 %v2398_v17  ;;  %2878 = vmatmul.bf16.vlgmr.msra.gmra.mxu0 %v2399_v13  ;;  %v1994_v45 = vsub.f32 1.0, %v1993_v55  ;;  %v3854_v56 = vld [vmem:[%s5287_s7] ss:$0 sm:$0xff] }
 0x6b4   :  { %2891 = vmatmul.bf16.vlgmr.msra.gmra.mxu1 %v2400_v36  ;;  %2904 = vmatmul.bf16.vlgmr.msra.gmra.mxu2 %v2401_v27  ;;  %v3115_v17 = vand.u32 127, %v3114_v50 }
 0x6b5   :  { %3101 = vmatpush.bf16.msrb.mxu3 %v3850_v49  ;;  %v1995_v36 = vmul.f32 %v1994_v45, %v1994_v45 }
 0x6b6   :  { %3021 = vmatpush.bf16.msrb.mxu2 %v3839_v44  ;;  %vm3116_vm15 = vcmp.eq.s32.totalorder %v3115_v17, 0 }
 0x6b9   :  { %3102 = vmatpush.bf16.msrb.mxu3 %v3849_v22 }
 0x6ba   :  { %3022 = vmatpush.bf16.msrb.mxu2 %v3838_v47 }
 0x6bd   :  { %3103 = vmatpush.bf16.msrb.mxu3 %v3848_v23 }
 0x6be   :  { %3023 = vmatpush.bf16.msrb.mxu2 %v3837_v39 }
 0x6c1   :  { %3104 = vmatpush.bf16.msrb.mxu3 %v3847_v37 }
 0x6c2   :  { %3024 = vmatpush.bf16.msrb.mxu2 %v3836_v11 }
 0x6c3   :  { %2917 = vmatmul.bf16.vlgmr.msra.gmra.mxu3 %v2402_v29  ;;  %2930 = vmatmul.bf16.vlgmr.msrb.gmra.mxu0 %v2403_v42 }
 0x6c4   :  { %2943 = vmatmul.bf16.vlgmr.msrb.gmra.mxu1 %v2404_v31 }
 0x6c5   :  { %3105 = vmatpush.bf16.msrb.mxu3 %v3846_v28 }
 0x6c6   :  { %3025 = vmatpush.bf16.msrb.mxu2 %v3835_v2 }
 0x6c9   :  { %3106 = vmatpush.bf16.msrb.mxu3 %v3845_v61 }
 0x6cd   :  { %3107 = vmatpush.bf16.msrb.mxu3 %v3844_v59 }
 0x6d1   :  { %3108 = vmatpush.bf16.msrb.mxu3 %v3843_v4 }
 0x730   :  { %v2879_v3 = vpop.f32.mrf.mxu0 }
 0x731   :  { %v2892_v16 = vpop.f32.mrf.mxu1 }
 0x736   :  { %v2866_v5 = vpop.f32.mrf.mxu3 }
 0x737   :  { %v2905_v58 = vpop.f32.mrf.mxu2  ;;  %v2867_v46 = vadd.f32 %v3852_v54, %v2866_v5 }
 0x738   :  { %v2881_v38 = vpop.f32.mrf.mxu0 }
 0x739   :  { %v2894_v20 = vpop.f32.mrf.mxu1  ;;  %v2880_v12 = vadd.f32 %v2879_v3, %v2867_v46 }
 0x73b   :  { %v2893_v57 = vadd.f32 %v2892_v16, %v2880_v12 }
 0x73d   :  { %v2906_v53 = vadd.f32 %v2905_v58, %v2893_v57 }
 0x73e   :  { %v2868_v34 = vpop.f32.mrf.mxu3 }
 0x73f   :  { %v2907_v15 = vpop.f32.mrf.mxu2 }
 0x740   :  { %v2931_v41 = vpop.f32.mrf.mxu0 }
 0x741   :  { %v2944_v21 = vpop.f32.mrf.mxu1 }
 0x746   :  { %v2918_v63 = vpop.f32.mrf.mxu3 }
 0x747   :  { %v2919_v24 = vadd.f32 %v2918_v63, %v2906_v53 }
 0x748   :  { %v2933_v26 = vpop.f32.mrf.mxu0 }
 0x749   :  { %v2932_v1 = vadd.f32 %v2931_v41, %v2919_v24  ;;  %v2946_v0 = vpop.f32.mrf.mxu1 }
 0x74b   :  { %v2945_v62 = vadd.f32 %v2944_v21, %v2932_v1 }
 0x74d   :  { %v2948_v7 = vmax.f32 %v2945_v62, 0.0 }
 0x74e   :  { %v2920_v6 = vpop.f32.mrf.mxu3 }
 0x74f   :  { %v2949_v18 = vpack.c.bf16 %v2948_v7, %v2948_v7 }
 0x751   :  { %3026 = vmatmul.bf16.vlgmr.msrb.gmra.mxu2 %v2949_v18 }
 0x7d4   :  { %v3027_v10 = vpop.f32.mrf.mxu2 }
 0x7d5   :  { %v3028_v35 = vadd.f32 %v3853_v43, %v3027_v10 }
 0x7d7   :  { %v3031_v19 = vmax.f32 %v3028_v35, 0.0 }
 0x7d9   :  { %v3032_v48 = vpack.c.bf16 %v3031_v19, %v3031_v19 }
 0x7db   :  { %3109 = vmatmul.bf16.vlgmr.msrb.gmra.mxu3 %v3032_v48 }
 0x7dc   :  { %v3029_v25 = vpop.f32.mrf.mxu2 }
 0x85e   :  { %v3110_v13 = vpop.f32.mrf.mxu3 }
 0x85f   :  { %v3111_v27 = vadd.f32 %v3854_v56, %v3110_v13 }
 0x861   :  { %v3117_v33 = vadd.f32 %v3111_v27, %v1995_v36 }
 0x863   :  { %v3118_v30 = vsel %vm3116_vm15, %v3117_v33, 0.0 }
 0x864   :  { %3119 = vst [vmem:[%s5288_s8] sm:$0x3] %v3118_v30 }
 0x866   :  { %v3112_v60 = vpop.f32.mrf.mxu3 }

</bundles_post_ra>
